<compile_context>
chip_gen: v6e
topology: v6e:2x2x1
jax: 0.10.0
libtpu: 0.0.40
codegen_flags: <defaults>
</compile_context>

<pallas_src>
import functools

import jax
import jax.numpy as jnp
from jax.experimental import pallas as pl
from jax.experimental.pallas import tpu as pltpu


# ---------------------------------------------------------------------------
# Wrapper-side constant builders (tiny, traced once under jit)
# ---------------------------------------------------------------------------
def _bilinear_up2_matrix(n):
    """(2n, n) matrix for 1-D bilinear 2x upsample, align_corners=False (clamped)."""
    o = jnp.arange(2 * n, dtype=jnp.float32)
    src = (o + 0.5) / 2.0 - 0.5
    i0 = jnp.floor(src)
    frac = src - i0
    i0c = jnp.clip(i0, 0, n - 1).astype(jnp.int32)
    i1c = jnp.clip(i0 + 1, 0, n - 1).astype(jnp.int32)
    eye = jnp.eye(n, dtype=jnp.float32)
    return (1.0 - frac)[:, None] * eye[i0c] + frac[:, None] * eye[i1c]


def _packed_w_upsample_matrix(u_w, c):
    """(W*C, 2W*C) right-multiply matrix doing the W-axis upsample in packed (H, W*C)."""
    w2, w = u_w.shape
    eye = jnp.eye(c, dtype=u_w.dtype)
    t = jnp.einsum('ow,cd->wcod', u_w, eye)          # [w_in, c, w_out, c']
    return t.reshape(w * c, w2 * c)


def _banded_conv_matrix(w, width):
    """Banded (Toeplitz) RHS for a 3x3 stride-1 pad-1 conv in packed (H, W*C) layout.

    w: (3, 3, Cin, Cout) HWIO.  Returns (3*width*Cin, width*Cout); the K axis is ordered
    [ky, x_in, cin] and matches an LHS of concat([rows y-1, rows y, rows y+1], lanes).
    Horizontal zero-padding is folded into the band structure (missing taps are zero).
    """
    kh, kw, cin, cout = w.shape
    xi = jnp.arange(width)[:, None]                  # input column
    xo = jnp.arange(width)[None, :]                  # output column
    dx = xi - xo + (kw // 2)
    sel = ((dx >= 0) & (dx < kw)).astype(w.dtype)    # (W, W)
    dxc = jnp.clip(dx, 0, kw - 1)
    t = w[:, dxc, :, :] * sel[None, :, :, None, None]   # (kh, W_in, W_out, Cin, Cout)
    t = jnp.transpose(t, (0, 1, 3, 2, 4))                # (kh, W_in, Cin, W_out, Cout)
    return t.reshape(kh * width * cin, width * cout)


# ---------------------------------------------------------------------------
# Fused Pallas kernel: upsample + threshold + PReLU1 + PConv1 + PReLU2 + PConv2
# ---------------------------------------------------------------------------
def _upsample_partialconv_kernel(
        x_ref, m_ref, uh_ref, uwk_ref,
        bw1_ref, ow1_ref, bw2_ref, ow2_ref,
        a1_ref, b1_ref, a2_ref, b2_ref,
        out_ref, mout_ref, *, c0, c1):
    f32 = jnp.float32
    x0 = x_ref[0].astype(f32)                # (H, W*C0)   packed original activation
    m0 = m_ref[0].astype(f32)                # (H, W*C0)   packed original mask
    uh = uh_ref[...]                         # (H2, H)
    uwk = uwk_ref[...]                       # (W*C0, W2*C0)

    # --- bilinear 2x upsample via two MXU matmuls (stays in packed layout) ---
    x_up = jnp.dot(uh, jnp.dot(x0, uwk, preferred_element_type=f32),
                   preferred_element_type=f32)                    # (H2, W2*C0)
    m_up = jnp.dot(uh, jnp.dot(m0, uwk, preferred_element_type=f32),
                   preferred_element_type=f32)
    m_up = (m_up > 0.5).astype(f32)          # matches (upsample(mask) > 0.5).float()

    def shifted_lhs(v):
        # rows [y-1, y, y+1] stacked along lanes; zero rows act as vertical padding.
        zero = jnp.zeros((1, v.shape[1]), f32)
        up = jnp.concatenate([zero, v[:-1, :]], axis=0)     # row y-1
        dn = jnp.concatenate([v[1:, :], zero], axis=0)      # row y+1
        return jnp.concatenate([up, v, dn], axis=1)         # (H2, 3*L)

    def partial_conv(xin, mask, bmat, omat, bias, slide):
        # NVIDIA multi_channel PartialConv2d semantics, all in packed lane-dense layout.
        raw = jnp.dot(shifted_lhs(xin * mask), bmat,
                      preferred_element_type=f32)            # (H2, W2*Cout)
        msum = jnp.dot(shifted_lhs(mask), omat,
                       preferred_element_type=f32)           # mask-count, bcast over Cout
        ratio = slide * pl.reciprocal(msum + 1e-8, approx=True)
        umask = jnp.clip(msum, 0.0, 1.0)
        ratio = ratio * umask
        out = (raw - bias) * ratio + bias
        return out * umask, umask

    # --- PReLU 1 + PartialConv2d 1 ---
    a1 = a1_ref[...]                                         # (1, W2*C0), per-channel tiled
    x1 = jnp.where(x_up >= 0.0, x_up, x_up * a1)
    y1, um1 = partial_conv(x1, m_up, bw1_ref[...], ow1_ref[...],
                           b1_ref[...], float(9 * c0))

    # --- PReLU 2 + PartialConv2d 2 (mask identical per channel, kept packed) ---
    a2 = a2_ref[...]
    x2 = jnp.where(y1 >= 0.0, y1, y1 * a2)
    y2, um2 = partial_conv(x2, um1, bw2_ref[...], ow2_ref[...],
                           b2_ref[...], float(9 * c1))

    out_ref[0] = y2.astype(out_ref.dtype)                    # lane-dense store (W2*C2)
    mout_ref[0] = um2.astype(mout_ref.dtype)


# ---------------------------------------------------------------------------
# Full module forward (NCHW in / NCHW out, like the PyTorch module)
# ---------------------------------------------------------------------------
def upsample_forward(x_nchw, mask_nchw, params):
    n, c0, h, w = x_nchw.shape
    c1 = params['w1'].shape[-1]
    c2 = params['w2'].shape[-1]
    h2, w2 = 2 * h, 2 * w

    # pack NCHW -> (N, H, W*C): channel fastest along lanes
    xp = jnp.transpose(x_nchw, (0, 2, 3, 1)).reshape(n, h, w * c0)
    mp = jnp.transpose(mask_nchw, (0, 2, 3, 1)).reshape(n, h, w * c0)

    u_h = _bilinear_up2_matrix(h)                                    # (H2, H)
    u_wk = _packed_w_upsample_matrix(_bilinear_up2_matrix(w), c0)    # (W*C0, W2*C0)

    bw1 = _banded_conv_matrix(params['w1'], w2)                      # (3*W2*C0, W2*C1)
    ow1 = _banded_conv_matrix(jnp.ones_like(params['w1']), w2)
    bw2 = _banded_conv_matrix(params['w2'], w2)                      # (3*W2*C1, W2*C2)
    ow2 = _banded_conv_matrix(jnp.ones_like(params['w2']), w2)

    a1t = jnp.tile(params['a1'], w2).reshape(1, w2 * c0)
    b1t = jnp.tile(params['b1'], w2).reshape(1, w2 * c1)
    a2t = jnp.tile(params['a2'], w2).reshape(1, w2 * c1)
    b2t = jnp.tile(params['b2'], w2).reshape(1, w2 * c2)

    kernel = functools.partial(_upsample_partialconv_kernel, c0=c0, c1=c1)

    def full(arr):
        nd = arr.ndim
        return pl.BlockSpec(arr.shape, lambda b: (0,) * nd)

    out, mout = pl.pallas_call(
        kernel,
        out_shape=(jax.ShapeDtypeStruct((n, h2, w2 * c2), jnp.float32),
                   jax.ShapeDtypeStruct((n, h2, w2 * c2), jnp.float32)),
        grid=(n,),
        in_specs=[
            pl.BlockSpec((1, h, w * c0), lambda b: (b, 0, 0)),
            pl.BlockSpec((1, h, w * c0), lambda b: (b, 0, 0)),
            full(u_h), full(u_wk),
            full(bw1), full(ow1), full(bw2), full(ow2),
            full(a1t), full(b1t), full(a2t), full(b2t),
        ],
        out_specs=(
            pl.BlockSpec((1, h2, w2 * c2), lambda b: (b, 0, 0)),
            pl.BlockSpec((1, h2, w2 * c2), lambda b: (b, 0, 0)),
        ),
        compiler_params=pltpu.CompilerParams(dimension_semantics=("parallel",)),
    )(xp, mp, u_h, u_wk, bw1, ow1, bw2, ow2, a1t, b1t, a2t, b2t)

    out_nchw = jnp.transpose(out.reshape(n, h2, w2, c2), (0, 3, 1, 2))
    mout_nchw = jnp.transpose(mout.reshape(n, h2, w2, c2), (0, 3, 1, 2))
    return out_nchw, mout_nchw


def init_params(key, int_channels):
    c0, c1, c2 = int_channels
    k1, k2, k3, k4 = jax.random.split(key, 4)
    return {
        "w1": 0.1 * jax.random.normal(k1, (3, 3, c0, c1), jnp.float32),   # HWIO
        "b1": 0.1 * jax.random.normal(k2, (c1,), jnp.float32),
        "a1": 0.25 * jnp.ones((c0,), jnp.float32),                        # PReLU init=0.25
        "w2": 0.1 * jax.random.normal(k3, (3, 3, c1, c2), jnp.float32),
        "b2": 0.1 * jax.random.normal(k4, (c2,), jnp.float32),
        "a2": 0.25 * jnp.ones((c1,), jnp.float32),
    }


# ---------------------------------------------------------------------------
# Pure-JAX reference (for a lightweight correctness check)
# ---------------------------------------------------------------------------
def _upsample2x_bilinear_ref(x):
    def up_axis(a, axis):
        n_ = a.shape[axis]
        o = jnp.arange(2 * n_, dtype=jnp.float32)
        src = (o + 0.5) / 2.0 - 0.5
        i0 = jnp.floor(src)
        frac = src - i0
        i0c = jnp.clip(i0, 0, n_ - 1).astype(jnp.int32)
        i1c = jnp.clip(i0 + 1, 0, n_ - 1).astype(jnp.int32)
        a0 = jnp.take(a, i0c, axis=axis)
        a1 = jnp.take(a, i1c, axis=axis)
        shape = [1] * a.ndim
        shape[axis] = 2 * n_
        wgt = frac.reshape(shape)
        return a0 * (1.0 - wgt) + a1 * wgt
    return up_axis(up_axis(x, 1), 2)


def _partial_conv_ref(x, mask, w, b):
    dn = ('NHWC', 'HWIO', 'NHWC')
    prec = jax.lax.Precision.HIGHEST
    raw = jax.lax.conv_general_dilated(x * mask, w, (1, 1), 'SAME',
                                       dimension_numbers=dn, precision=prec)
    msum = jax.lax.conv_general_dilated(mask, jnp.ones_like(w), (1, 1), 'SAME',
                                        dimension_numbers=dn, precision=prec)
    slide = float(w.shape[0] * w.shape[1] * w.shape[2])
    ratio = slide / (msum + 1e-8)
    umask = jnp.clip(msum, 0.0, 1.0)
    ratio = ratio * umask
    out = (raw - b) * ratio + b
    return out * umask, umask


def upsample_forward_ref(x_nchw, mask_nchw, params):
    x = jnp.transpose(x_nchw, (0, 2, 3, 1))
    m = jnp.transpose(mask_nchw, (0, 2, 3, 1))
    x = _upsample2x_bilinear_ref(x)
    m = (_upsample2x_bilinear_ref(m) > 0.5).astype(jnp.float32)
    x = jnp.where(x >= 0, x, x * params['a1'])
    x, m = _partial_conv_ref(x, m, params['w1'], params['b1'])
    x = jnp.where(x >= 0, x, x * params['a2'])
    x, m = _partial_conv_ref(x, m, params['w2'], params['b2'])
    return jnp.transpose(x, (0, 3, 1, 2)), jnp.transpose(m, (0, 3, 1, 2))


if __name__ == "__main__":
    key = jax.random.PRNGKey(0)
    k_x, k_m, k_p = jax.random.split(key, 3)

    int_channels = (4, 8, 4)     # intChannels[0..2]
    n, h, w = 2, 16, 16          # upsampled spatial = 32x32

    x = jax.random.normal(k_x, (n, int_channels[0], h, w), jnp.float32)          # NCHW
    mask = jax.random.bernoulli(k_m, 0.7, (n, int_channels[0], h, w)).astype(jnp.float32)
    params = init_params(k_p, int_channels)

    fwd = jax.jit(upsample_forward)
    out, mask_out = fwd(x, mask, params)
    jax.block_until_ready((out, mask_out))

    assert out.shape == (n, int_channels[2], 2 * h, 2 * w)
    assert mask_out.shape == (n, int_channels[2], 2 * h, 2 * w)

    # Lightweight correctness check vs pure-JAX reference.  Loose activation tolerance
    # because the kernel uses the EUP approximate reciprocal for mask renormalisation.
    ref_out, ref_mask = upsample_forward_ref(x, mask, params)
    assert float(jnp.max(jnp.abs(mask_out - ref_mask))) < 1e-5
    assert float(jnp.max(jnp.abs(out - ref_out))) < 0.25

    print("KERNEL_OK")
</pallas_src>

<mosaic_0001>
module attributes {stable_mosaic.version = 11 : i64} {
  func.func @_upsample_partialconv_kernel(%arg0: i32, %arg1: memref<1x16x64xf32, #tpu.memory_space<vmem>>, %arg2: memref<1x16x64xf32, #tpu.memory_space<vmem>>, %arg3: memref<32x16xf32, #tpu.memory_space<vmem>>, %arg4: memref<64x128xf32, #tpu.memory_space<vmem>>, %arg5: memref<384x256xf32, #tpu.memory_space<vmem>>, %arg6: memref<384x256xf32, #tpu.memory_space<vmem>>, %arg7: memref<768x128xf32, #tpu.memory_space<vmem>>, %arg8: memref<768x128xf32, #tpu.memory_space<vmem>>, %arg9: memref<1x128xf32, #tpu.memory_space<vmem>>, %arg10: memref<1x256xf32, #tpu.memory_space<vmem>>, %arg11: memref<1x256xf32, #tpu.memory_space<vmem>>, %arg12: memref<1x128xf32, #tpu.memory_space<vmem>>, %arg13: memref<1x32x128xf32, #tpu.memory_space<vmem>>, %arg14: memref<1x32x128xf32, #tpu.memory_space<vmem>>) attributes {dimension_semantics = [#tpu.dimension_semantics<parallel>], iteration_bounds = array<i64: 2>, scalar_prefetch = 0 : i64, scratch_operands = 0 : i64, tpu.core_type = #tpu.core_type<tc>, window_params = [{transform_indices = @transform_0, window_bounds = array<i64: 1, 16, 64>}, {transform_indices = @transform_1, window_bounds = array<i64: 1, 16, 64>}, {pipeline_mode = #tpu.pipeline_mode<synchronous>, transform_indices = @transform_2, window_bounds = array<i64: 32, 16>}, {pipeline_mode = #tpu.pipeline_mode<synchronous>, transform_indices = @transform_3, window_bounds = array<i64: 64, 128>}, {pipeline_mode = #tpu.pipeline_mode<synchronous>, transform_indices = @transform_4, window_bounds = array<i64: 384, 256>}, {pipeline_mode = #tpu.pipeline_mode<synchronous>, transform_indices = @transform_5, window_bounds = array<i64: 384, 256>}, {pipeline_mode = #tpu.pipeline_mode<synchronous>, transform_indices = @transform_6, window_bounds = array<i64: 768, 128>}, {pipeline_mode = #tpu.pipeline_mode<synchronous>, transform_indices = @transform_7, window_bounds = array<i64: 768, 128>}, {pipeline_mode = #tpu.pipeline_mode<synchronous>, transform_indices = @transform_8, window_bounds = array<i64: 1, 128>}, {pipeline_mode = #tpu.pipeline_mode<synchronous>, transform_indices = @transform_9, window_bounds = array<i64: 1, 256>}, {pipeline_mode = #tpu.pipeline_mode<synchronous>, transform_indices = @transform_10, window_bounds = array<i64: 1, 256>}, {pipeline_mode = #tpu.pipeline_mode<synchronous>, transform_indices = @transform_11, window_bounds = array<i64: 1, 128>}, {transform_indices = @transform_12, window_bounds = array<i64: 1, 32, 128>}, {transform_indices = @transform_13, window_bounds = array<i64: 1, 32, 128>}]} {
    %c0 = arith.constant 0 : index
    %c0_0 = arith.constant 0 : index
    %c0_1 = arith.constant 0 : index
    %0 = vector.load %arg1[%c0, %c0_0, %c0_1] : memref<1x16x64xf32, #tpu.memory_space<vmem>>, vector<1x16x64xf32>
    %1 = vector.shape_cast %0 : vector<1x16x64xf32> to vector<16x64xf32>
    %c0_2 = arith.constant 0 : index
    %c0_3 = arith.constant 0 : index
    %c0_4 = arith.constant 0 : index
    %2 = vector.load %arg2[%c0_2, %c0_3, %c0_4] : memref<1x16x64xf32, #tpu.memory_space<vmem>>, vector<1x16x64xf32>
    %3 = vector.shape_cast %2 : vector<1x16x64xf32> to vector<16x64xf32>
    %c0_5 = arith.constant 0 : index
    %c0_6 = arith.constant 0 : index
    %4 = vector.load %arg3[%c0_5, %c0_6] : memref<32x16xf32, #tpu.memory_space<vmem>>, vector<32x16xf32>
    %c0_7 = arith.constant 0 : index
    %c0_8 = arith.constant 0 : index
    %5 = vector.load %arg4[%c0_7, %c0_8] : memref<64x128xf32, #tpu.memory_space<vmem>>, vector<64x128xf32>
    %cst = arith.constant dense<0.000000e+00> : vector<16x128xf32>
    %6 = tpu.matmul %1, %5, %cst {dimension_numbers = #tpu.dot_dimension_numbers<[1], [0], [0], [1], [0, 0, 1, 1], [], []>} : vector<16x64xf32>, vector<64x128xf32>, vector<16x128xf32> -> vector<16x128xf32>
    %cst_9 = arith.constant dense<0.000000e+00> : vector<32x128xf32>
    %7 = tpu.matmul %4, %6, %cst_9 {dimension_numbers = #tpu.dot_dimension_numbers<[1], [0], [0], [1], [0, 0, 1, 1], [], []>} : vector<32x16xf32>, vector<16x128xf32>, vector<32x128xf32> -> vector<32x128xf32>
    %cst_10 = arith.constant dense<0.000000e+00> : vector<16x128xf32>
    %8 = tpu.matmul %3, %5, %cst_10 {dimension_numbers = #tpu.dot_dimension_numbers<[1], [0], [0], [1], [0, 0, 1, 1], [], []>} : vector<16x64xf32>, vector<64x128xf32>, vector<16x128xf32> -> vector<16x128xf32>
    %cst_11 = arith.constant dense<0.000000e+00> : vector<32x128xf32>
    %9 = tpu.matmul %4, %8, %cst_11 {dimension_numbers = #tpu.dot_dimension_numbers<[1], [0], [0], [1], [0, 0, 1, 1], [], []>} : vector<32x16xf32>, vector<16x128xf32>, vector<32x128xf32> -> vector<32x128xf32>
    %cst_12 = arith.constant 5.000000e-01 : f32
    %10 = vector.broadcast %cst_12 : f32 to vector<32x128xf32>
    %11 = arith.cmpf ogt, %9, %10 : vector<32x128xf32>
    %12 = arith.extui %11 : vector<32x128xi1> to vector<32x128xi32>
    %13 = arith.sitofp %12 : vector<32x128xi32> to vector<32x128xf32>
    %c0_13 = arith.constant 0 : index
    %c0_14 = arith.constant 0 : index
    %14 = vector.load %arg9[%c0_13, %c0_14] : memref<1x128xf32, #tpu.memory_space<vmem>>, vector<1x128xf32>
    %cst_15 = arith.constant 0.000000e+00 : f32
    %15 = vector.broadcast %cst_15 : f32 to vector<32x128xf32>
    %16 = arith.cmpf oge, %7, %15 : vector<32x128xf32>
    %17 = vector.broadcast %14 : vector<1x128xf32> to vector<32x128xf32>
    %18 = arith.mulf %7, %17 : vector<32x128xf32>
    %19 = arith.select %16, %7, %18 : vector<32x128xi1>, vector<32x128xf32>
    %c0_16 = arith.constant 0 : index
    %c0_17 = arith.constant 0 : index
    %20 = vector.load %arg5[%c0_16, %c0_17] : memref<384x256xf32, #tpu.memory_space<vmem>>, vector<384x256xf32>
    %c0_18 = arith.constant 0 : index
    %c0_19 = arith.constant 0 : index
    %21 = vector.load %arg6[%c0_18, %c0_19] : memref<384x256xf32, #tpu.memory_space<vmem>>, vector<384x256xf32>
    %c0_20 = arith.constant 0 : index
    %c0_21 = arith.constant 0 : index
    %22 = vector.load %arg10[%c0_20, %c0_21] : memref<1x256xf32, #tpu.memory_space<vmem>>, vector<1x256xf32>
    %23 = arith.mulf %19, %13 : vector<32x128xf32>
    %cst_22 = arith.constant 0.000000e+00 : f32
    %24 = vector.broadcast %cst_22 : f32 to vector<1x128xf32>
    %25 = vector.extract_strided_slice %23 {offsets = [0, 0], sizes = [31, 128], strides = [1, 1]} : vector<32x128xf32> to vector<31x128xf32>
    %26 = tpu.concatenate %24, %25 in 0 : vector<1x128xf32>, vector<31x128xf32> -> vector<32x128xf32>
    %27 = vector.extract_strided_slice %23 {offsets = [1, 0], sizes = [31, 128], strides = [1, 1]} : vector<32x128xf32> to vector<31x128xf32>
    %28 = tpu.concatenate %27, %24 in 0 : vector<31x128xf32>, vector<1x128xf32> -> vector<32x128xf32>
    %29 = tpu.concatenate %26, %23, %28 in 1 : vector<32x128xf32>, vector<32x128xf32>, vector<32x128xf32> -> vector<32x384xf32>
    %cst_23 = arith.constant dense<0.000000e+00> : vector<32x256xf32>
    %30 = tpu.matmul %29, %20, %cst_23 {dimension_numbers = #tpu.dot_dimension_numbers<[1], [0], [0], [1], [0, 0, 1, 1], [], []>} : vector<32x384xf32>, vector<384x256xf32>, vector<32x256xf32> -> vector<32x256xf32>
    %cst_24 = arith.constant 0.000000e+00 : f32
    %31 = vector.broadcast %cst_24 : f32 to vector<1x128xf32>
    %32 = vector.extract_strided_slice %13 {offsets = [0, 0], sizes = [31, 128], strides = [1, 1]} : vector<32x128xf32> to vector<31x128xf32>
    %33 = tpu.concatenate %31, %32 in 0 : vector<1x128xf32>, vector<31x128xf32> -> vector<32x128xf32>
    %34 = vector.extract_strided_slice %13 {offsets = [1, 0], sizes = [31, 128], strides = [1, 1]} : vector<32x128xf32> to vector<31x128xf32>
    %35 = tpu.concatenate %34, %31 in 0 : vector<31x128xf32>, vector<1x128xf32> -> vector<32x128xf32>
    %36 = tpu.concatenate %33, %13, %35 in 1 : vector<32x128xf32>, vector<32x128xf32>, vector<32x128xf32> -> vector<32x384xf32>
    %cst_25 = arith.constant dense<0.000000e+00> : vector<32x256xf32>
    %37 = tpu.matmul %36, %21, %cst_25 {dimension_numbers = #tpu.dot_dimension_numbers<[1], [0], [0], [1], [0, 0, 1, 1], [], []>} : vector<32x384xf32>, vector<384x256xf32>, vector<32x256xf32> -> vector<32x256xf32>
    %cst_26 = arith.constant 9.99999993E-9 : f32
    %38 = vector.broadcast %cst_26 : f32 to vector<32x256xf32>
    %39 = arith.addf %37, %38 : vector<32x256xf32>
    %40 = tpu.reciprocal %39 {approx = true} : vector<32x256xf32> -> vector<32x256xf32>
    %cst_27 = arith.constant 3.600000e+01 : f32
    %41 = vector.broadcast %cst_27 : f32 to vector<32x256xf32>
    %42 = arith.mulf %41, %40 : vector<32x256xf32>
    %cst_28 = arith.constant 0.000000e+00 : f32
    %cst_29 = arith.constant 1.000000e+00 : f32
    %43 = vector.broadcast %cst_28 : f32 to vector<32x256xf32>
    %44 = arith.maximumf %43, %37 : vector<32x256xf32>
    %45 = vector.broadcast %cst_29 : f32 to vector<32x256xf32>
    %46 = arith.minimumf %45, %44 : vector<32x256xf32>
    %47 = arith.mulf %42, %46 : vector<32x256xf32>
    %48 = vector.broadcast %22 : vector<1x256xf32> to vector<32x256xf32>
    %49 = arith.subf %30, %48 : vector<32x256xf32>
    %50 = arith.mulf %49, %47 : vector<32x256xf32>
    %51 = vector.broadcast %22 : vector<1x256xf32> to vector<32x256xf32>
    %52 = arith.addf %50, %51 : vector<32x256xf32>
    %53 = arith.mulf %52, %46 : vector<32x256xf32>
    %c0_30 = arith.constant 0 : index
    %c0_31 = arith.constant 0 : index
    %54 = vector.load %arg11[%c0_30, %c0_31] : memref<1x256xf32, #tpu.memory_space<vmem>>, vector<1x256xf32>
    %cst_32 = arith.constant 0.000000e+00 : f32
    %55 = vector.broadcast %cst_32 : f32 to vector<32x256xf32>
    %56 = arith.cmpf oge, %53, %55 : vector<32x256xf32>
    %57 = vector.broadcast %54 : vector<1x256xf32> to vector<32x256xf32>
    %58 = arith.mulf %53, %57 : vector<32x256xf32>
    %59 = arith.select %56, %53, %58 : vector<32x256xi1>, vector<32x256xf32>
    %c0_33 = arith.constant 0 : index
    %c0_34 = arith.constant 0 : index
    %60 = vector.load %arg7[%c0_33, %c0_34] : memref<768x128xf32, #tpu.memory_space<vmem>>, vector<768x128xf32>
    %c0_35 = arith.constant 0 : index
    %c0_36 = arith.constant 0 : index
    %61 = vector.load %arg8[%c0_35, %c0_36] : memref<768x128xf32, #tpu.memory_space<vmem>>, vector<768x128xf32>
    %c0_37 = arith.constant 0 : index
    %c0_38 = arith.constant 0 : index
    %62 = vector.load %arg12[%c0_37, %c0_38] : memref<1x128xf32, #tpu.memory_space<vmem>>, vector<1x128xf32>
    %63 = arith.mulf %59, %46 : vector<32x256xf32>
    %cst_39 = arith.constant 0.000000e+00 : f32
    %64 = vector.broadcast %cst_39 : f32 to vector<1x256xf32>
    %65 = vector.extract_strided_slice %63 {offsets = [0, 0], sizes = [31, 256], strides = [1, 1]} : vector<32x256xf32> to vector<31x256xf32>
    %66 = tpu.concatenate %64, %65 in 0 : vector<1x256xf32>, vector<31x256xf32> -> vector<32x256xf32>
    %67 = vector.extract_strided_slice %63 {offsets = [1, 0], sizes = [31, 256], strides = [1, 1]} : vector<32x256xf32> to vector<31x256xf32>
    %68 = tpu.concatenate %67, %64 in 0 : vector<31x256xf32>, vector<1x256xf32> -> vector<32x256xf32>
    %69 = tpu.concatenate %66, %63, %68 in 1 : vector<32x256xf32>, vector<32x256xf32>, vector<32x256xf32> -> vector<32x768xf32>
    %cst_40 = arith.constant dense<0.000000e+00> : vector<32x128xf32>
    %70 = tpu.matmul %69, %60, %cst_40 {dimension_numbers = #tpu.dot_dimension_numbers<[1], [0], [0], [1], [0, 0, 1, 1], [], []>} : vector<32x768xf32>, vector<768x128xf32>, vector<32x128xf32> -> vector<32x128xf32>
    %cst_41 = arith.constant 0.000000e+00 : f32
    %71 = vector.broadcast %cst_41 : f32 to vector<1x256xf32>
    %72 = vector.extract_strided_slice %46 {offsets = [0, 0], sizes = [31, 256], strides = [1, 1]} : vector<32x256xf32> to vector<31x256xf32>
    %73 = tpu.concatenate %71, %72 in 0 : vector<1x256xf32>, vector<31x256xf32> -> vector<32x256xf32>
    %74 = vector.extract_strided_slice %46 {offsets = [1, 0], sizes = [31, 256], strides = [1, 1]} : vector<32x256xf32> to vector<31x256xf32>
    %75 = tpu.concatenate %74, %71 in 0 : vector<31x256xf32>, vector<1x256xf32> -> vector<32x256xf32>
    %76 = tpu.concatenate %73, %46, %75 in 1 : vector<32x256xf32>, vector<32x256xf32>, vector<32x256xf32> -> vector<32x768xf32>
    %cst_42 = arith.constant dense<0.000000e+00> : vector<32x128xf32>
    %77 = tpu.matmul %76, %61, %cst_42 {dimension_numbers = #tpu.dot_dimension_numbers<[1], [0], [0], [1], [0, 0, 1, 1], [], []>} : vector<32x768xf32>, vector<768x128xf32>, vector<32x128xf32> -> vector<32x128xf32>
    %cst_43 = arith.constant 9.99999993E-9 : f32
    %78 = vector.broadcast %cst_43 : f32 to vector<32x128xf32>
    %79 = arith.addf %77, %78 : vector<32x128xf32>
    %80 = tpu.reciprocal %79 {approx = true} : vector<32x128xf32> -> vector<32x128xf32>
    %cst_44 = arith.constant 7.200000e+01 : f32
    %81 = vector.broadcast %cst_44 : f32 to vector<32x128xf32>
    %82 = arith.mulf %81, %80 : vector<32x128xf32>
    %cst_45 = arith.constant 0.000000e+00 : f32
    %cst_46 = arith.constant 1.000000e+00 : f32
    %83 = vector.broadcast %cst_45 : f32 to vector<32x128xf32>
    %84 = arith.maximumf %83, %77 : vector<32x128xf32>
    %85 = vector.broadcast %cst_46 : f32 to vector<32x128xf32>
    %86 = arith.minimumf %85, %84 : vector<32x128xf32>
    %87 = arith.mulf %82, %86 : vector<32x128xf32>
    %88 = vector.broadcast %62 : vector<1x128xf32> to vector<32x128xf32>
    %89 = arith.subf %70, %88 : vector<32x128xf32>
    %90 = arith.mulf %89, %87 : vector<32x128xf32>
    %91 = vector.broadcast %62 : vector<1x128xf32> to vector<32x128xf32>
    %92 = arith.addf %90, %91 : vector<32x128xf32>
    %93 = arith.mulf %92, %86 : vector<32x128xf32>
    %c0_47 = arith.constant 0 : index
    %c0_48 = arith.constant 0 : index
    %c0_49 = arith.constant 0 : index
    %94 = vector.load %arg13[%c0_47, %c0_48, %c0_49] : memref<1x32x128xf32, #tpu.memory_space<vmem>>, vector<1x32x128xf32>
    %95 = vector.shape_cast %94 : vector<1x32x128xf32> to vector<32x128xf32>
    %96 = vector.shape_cast %93 : vector<32x128xf32> to vector<1x32x128xf32>
    tpu.vector_store %arg13[%c0_47, %c0_48, %c0_49], %96 {strides = array<i32>} : memref<1x32x128xf32, #tpu.memory_space<vmem>>, vector<1x32x128xf32>,
    %c0_50 = arith.constant 0 : index
    %c0_51 = arith.constant 0 : index
    %c0_52 = arith.constant 0 : index
    %97 = vector.load %arg14[%c0_50, %c0_51, %c0_52] : memref<1x32x128xf32, #tpu.memory_space<vmem>>, vector<1x32x128xf32>
    %98 = vector.shape_cast %97 : vector<1x32x128xf32> to vector<32x128xf32>
    %99 = vector.shape_cast %86 : vector<32x128xf32> to vector<1x32x128xf32>
    tpu.vector_store %arg14[%c0_50, %c0_51, %c0_52], %99 {strides = array<i32>} : memref<1x32x128xf32, #tpu.memory_space<vmem>>, vector<1x32x128xf32>,
    return
  }
  func.func @transform_0(%arg0: i32) -> (i32, i32, i32) {
    %c0_i32 = arith.constant 0 : i32
    %c0_i32_0 = arith.constant 0 : i32
    %c0_i32_1 = arith.constant 0 : i32
    return %arg0, %c0_i32, %c0_i32_0 : i32, i32, i32
  }
  func.func @transform_1(%arg0: i32) -> (i32, i32, i32) {
    %c0_i32 = arith.constant 0 : i32
    %c0_i32_0 = arith.constant 0 : i32
    %c0_i32_1 = arith.constant 0 : i32
    return %arg0, %c0_i32, %c0_i32_0 : i32, i32, i32
  }
  func.func @transform_2(%arg0: i32) -> (i32, i32) {
    %c0_i32 = arith.constant 0 : i32
    %c0_i32_0 = arith.constant 0 : i32
    %c0_i32_1 = arith.constant 0 : i32
    return %c0_i32, %c0_i32_0 : i32, i32
  }
  func.func @transform_3(%arg0: i32) -> (i32, i32) {
    %c0_i32 = arith.constant 0 : i32
    %c0_i32_0 = arith.constant 0 : i32
    %c0_i32_1 = arith.constant 0 : i32
    return %c0_i32, %c0_i32_0 : i32, i32
  }
  func.func @transform_4(%arg0: i32) -> (i32, i32) {
    %c0_i32 = arith.constant 0 : i32
    %c0_i32_0 = arith.constant 0 : i32
    %c0_i32_1 = arith.constant 0 : i32
    return %c0_i32, %c0_i32_0 : i32, i32
  }
  func.func @transform_5(%arg0: i32) -> (i32, i32) {
    %c0_i32 = arith.constant 0 : i32
    %c0_i32_0 = arith.constant 0 : i32
    %c0_i32_1 = arith.constant 0 : i32
    return %c0_i32, %c0_i32_0 : i32, i32
  }
  func.func @transform_6(%arg0: i32) -> (i32, i32) {
    %c0_i32 = arith.constant 0 : i32
    %c0_i32_0 = arith.constant 0 : i32
    %c0_i32_1 = arith.constant 0 : i32
    return %c0_i32, %c0_i32_0 : i32, i32
  }
  func.func @transform_7(%arg0: i32) -> (i32, i32) {
    %c0_i32 = arith.constant 0 : i32
    %c0_i32_0 = arith.constant 0 : i32
    %c0_i32_1 = arith.constant 0 : i32
    return %c0_i32, %c0_i32_0 : i32, i32
  }
  func.func @transform_8(%arg0: i32) -> (i32, i32) {
    %c0_i32 = arith.constant 0 : i32
    %c0_i32_0 = arith.constant 0 : i32
    %c0_i32_1 = arith.constant 0 : i32
    return %c0_i32, %c0_i32_0 : i32, i32
  }
  func.func @transform_9(%arg0: i32) -> (i32, i32) {
    %c0_i32 = arith.constant 0 : i32
    %c0_i32_0 = arith.constant 0 : i32
    %c0_i32_1 = arith.constant 0 : i32
    return %c0_i32, %c0_i32_0 : i32, i32
  }
  func.func @transform_10(%arg0: i32) -> (i32, i32) {
    %c0_i32 = arith.constant 0 : i32
    %c0_i32_0 = arith.constant 0 : i32
    %c0_i32_1 = arith.constant 0 : i32
    return %c0_i32, %c0_i32_0 : i32, i32
  }
  func.func @transform_11(%arg0: i32) -> (i32, i32) {
    %c0_i32 = arith.constant 0 : i32
    %c0_i32_0 = arith.constant 0 : i32
    %c0_i32_1 = arith.constant 0 : i32
    return %c0_i32, %c0_i32_0 : i32, i32
  }
  func.func @transform_12(%arg0: i32) -> (i32, i32, i32) {
    %c0_i32 = arith.constant 0 : i32
    %c0_i32_0 = arith.constant 0 : i32
    %c0_i32_1 = arith.constant 0 : i32
    return %arg0, %c0_i32, %c0_i32_0 : i32, i32, i32
  }
  func.func @transform_13(%arg0: i32) -> (i32, i32, i32) {
    %c0_i32 = arith.constant 0 : i32
    %c0_i32_0 = arith.constant 0 : i32
    %c0_i32_1 = arith.constant 0 : i32
    return %arg0, %c0_i32, %c0_i32_0 : i32, i32, i32
  }
}

</mosaic_0001>

<bundles_post_ra>
// kernel: tile.28
= control target key start
LH: loop header
LB: loop body
LE: loop exit
PB: predicated region body
PF: predicated region fallthrough
CT: control target
= control target key end

     0   :  { %s40_s0 = inlined_call_operand.vmem [shape: f32[8], index: 0, kind: input, shape index: {}]   ;;  %s41_s1 = inlined_call_operand.vmem [shape: f32[32,8], index: 1, kind: output, shape index: {}]  }
   0x1   :  { %v4_v0 = vld [vmem:[%s40_s0] ss:$0 sm:$0xff] }
   0x2   :  { %5 = vst [vmem:[%s41_s1] sm:$0xff] %v4_v0  ;;  %12 = vst [vmem:[%s41_s1 + $0x8] sm:$0xff] %v4_v0 }
   0x3   :  { %13 = vst [vmem:[%s41_s1 + $0x10] sm:$0xff] %v4_v0  ;;  %14 = vst [vmem:[%s41_s1 + $0x18] sm:$0xff] %v4_v0 }

// kernel: tile.29
= control target key start
LH: loop header
LB: loop body
LE: loop exit
PB: predicated region body
PF: predicated region fallthrough
CT: control target
= control target key end

     0   :  { %s7_s6 = smov 3  ;;  %s21_s9 = smov 3  ;;  %vm4_vm0 = vcmask 64512   ;;  %vm11_vm1 = vcmask 1048512   ;;  %vm18_vm2 = vcmask 982912   ;;  %vm25_vm3 = vcmask 917312   ;;  %s235_s0 = inlined_call_operand.vmem [shape: f32[32,8], index: 0, kind: input, shape index: {}]   ;;  %s236_s1 = inlined_call_operand.vmem [shape: f32[1,256], index: 1, kind: output, shape index: {}]  }
   0x1   :  { %v125_v0 = vld [vmem:[%s235_s0 + $0xf] ss:$16 sm:%s7_s6]   ;;  %s156_s10 = smov 120   ;;  %v127_v1 = vld [vmem:[%s235_s0 + $0xd] ss:$16 sm:%s21_s9]   ;;  %s14_s13 = smov 3 }
   0x2   :  { %9 = vrot.lane.b32.xlu0 %v125_v0, %s156_s10  ;;  %s157_s14 = smov 104   ;;  %v126_v2 = vld [vmem:[%s235_s0 + $0xe] ss:$16 sm:%s14_s13]   ;;  %s28_s17 = smov 3  ;;  %vm32_vm4 = vcmask 851712   ;;  %vm39_vm5 = vcmask 786112  }
   0x3   :  { %23 = vrot.lane.b32.xlu1 %v127_v1, %s157_s14  ;;  %v128_v3 = vld [vmem:[%s235_s0 + $0xc] ss:$16 sm:%s28_s17]   ;;  %s35_s20 = smov 3  ;;  %s42_s21 = smov 3  ;;  %vm46_vm6 = vcmask 720512   ;;  %vm53_vm7 = vcmask 654912  }
   0x4   :  { %s158_s22 = smov 112   ;;  %s159_s23 = smov 96   ;;  %v129_v4 = vld [vmem:[%s235_s0 + $0xb] ss:$16 sm:%s35_s20]   ;;  %v130_v5 = vld [vmem:[%s235_s0 + $0xa] ss:$16 sm:%s42_s21]  }
   0x5   :  { %s49_s28 = smov 3  ;;  %s56_s29 = smov 3  ;;  %vm60_vm8 = vcmask 589312   ;;  %vm67_vm9 = vcmask 523712   ;;  %vm74_vm10 = vcmask 458112   ;;  %vm81_vm11 = vcmask 392512  }
   0x6   :  { %16 = vrot.lane.b32.xlu0 %v126_v2, %s158_s22  ;;  %s160_s30 = smov 88   ;;  %s161_s2 = smov 80   ;;  %v131_v6 = vld [vmem:[%s235_s0 + $0x9] ss:$16 sm:%s49_s28]   ;;  %vm88_vm12 = vcmask 326912   ;;  %vm95_vm13 = vcmask 261312  }
   0x7   :  { %30 = vrot.lane.b32.xlu1 %v128_v3, %s159_s23  ;;  %v132_v7 = vld [vmem:[%s235_s0 + $0x8] ss:$16 sm:%s56_s29]   ;;  %s63_s7 = smov 3  ;;  %s70_s8 = smov 3  ;;  %vm102_vm14 = vcmask 195712   ;;  %vm109_vm15 = vcmask 130112  }
   0x8   :  { %s162_s9 = smov 72   ;;  %s163_s10 = smov 64   ;;  %v133_v8 = vld [vmem:[%s235_s0 + $0x7] ss:$16 sm:%s63_s7]   ;;  %v134_v9 = vld [vmem:[%s235_s0 + $0x6] ss:$16 sm:%s70_s8]  }
   0x9   :  { %s2_s13 = smov 3  ;;  %s77_s16 = smov 3 }
   0xa   :  { %37 = vrot.lane.b32.xlu0 %v129_v4, %s160_s30  ;;  %v3_v10 = vld [vmem:[%s235_s0] ss:$16 sm:%s2_s13]   ;;  %s84_s19 = smov 3  ;;  %s164_s20 = smov 56  }
   0xb   :  { %44 = vrot.lane.b32.xlu1 %v130_v5, %s161_s2  ;;  %5 = vst.msk [vmem:[#allocation0] ss:$8 sm:$0x3] %vm4_vm0, %v3_v10   ;;  %s165_s21 = smov 48   ;;  %v135_v11 = vld [vmem:[%s235_s0 + $0x5] ss:$16 sm:%s77_s16]  }
   0xc   :  { %v136_v12 = vld [vmem:[%s235_s0 + $0x4] ss:$16 sm:%s84_s19]   ;;  %s91_s26 = smov 3  ;;  %s98_s27 = smov 3 }
   0xd   :  { %s166_s28 = smov 40   ;;  %s167_s29 = smov 32   ;;  %v137_v13 = vld [vmem:[%s235_s0 + $0x3] ss:$16 sm:%s91_s26]   ;;  %v138_v14 = vld [vmem:[%s235_s0 + $0x2] ss:$16 sm:%s98_s27]  }
   0xe   :  { %51 = vrot.lane.b32.xlu0 %v131_v6, %s162_s9  ;;  %s105_s5 = smov 3  ;;  %s168_s6 = smov 24  }
   0xf   :  { %58 = vrot.lane.b32.xlu1 %v132_v7, %s163_s10  ;;  %s169_s7 = smov 16   ;;  %v139_v15 = vld [vmem:[%s235_s0 + $0x1] ss:$16 sm:%s105_s5]   ;;  %s170_s0 = smov 8  }
  0x12   :  { %65 = vrot.lane.b32.xlu0 %v133_v8, %s164_s20 }
  0x13   :  { %72 = vrot.lane.b32.xlu1 %v134_v9, %s165_s21 }
  0x16   :  { %79 = vrot.lane.b32.xlu0 %v135_v11, %s166_s28 }
  0x17   :  { %86 = vrot.lane.b32.xlu1 %v136_v12, %s167_s29 }
  0x1a   :  { %93 = vrot.lane.b32.xlu0 %v137_v13, %s168_s6 }
  0x1b   :  { %100 = vrot.lane.b32.xlu1 %v138_v14, %s169_s7 }
  0x1e   :  { %107 = vrot.lane.b32.xlu0 %v139_v15, %s170_s0 }
  0x74   :  { %v10_v16 = vpop.permute.xlu0 %9  }
  0x75   :  { %12 = vst.msk [vmem:[#allocation0] ss:$8 sm:$0x3] %vm11_vm1, %v10_v16   ;;  %v24_v17 = vpop.permute.xlu1 %23  }
  0x78   :  { %v17_v18 = vpop.permute.xlu0 %16  }
  0x79   :  { %19 = vst.msk [vmem:[#allocation0] ss:$8 sm:$0x3] %vm18_vm2, %v17_v18   ;;  %v31_v19 = vpop.permute.xlu1 %30  }
  0x7a   :  { %26 = vst.msk [vmem:[#allocation0] ss:$8 sm:$0x3] %vm25_vm3, %v24_v17  }
  0x7b   :  { %33 = vst.msk [vmem:[#allocation0] ss:$8 sm:$0x3] %vm32_vm4, %v31_v19  }
  0x7c   :  { %v38_v20 = vpop.permute.xlu0 %37  }
  0x7d   :  { %40 = vst.msk [vmem:[#allocation0] ss:$8 sm:$0x3] %vm39_vm5, %v38_v20   ;;  %v45_v21 = vpop.permute.xlu1 %44  }
  0x7e   :  { %47 = vst.msk [vmem:[#allocation0] ss:$8 sm:$0x3] %vm46_vm6, %v45_v21  }
  0x80   :  { %v52_v22 = vpop.permute.xlu0 %51  }
  0x81   :  { %54 = vst.msk [vmem:[#allocation0] ss:$8 sm:$0x3] %vm53_vm7, %v52_v22   ;;  %v59_v23 = vpop.permute.xlu1 %58  }
  0x82   :  { %61 = vst.msk [vmem:[#allocation0] ss:$8 sm:$0x3] %vm60_vm8, %v59_v23  }
  0x84   :  { %v66_v24 = vpop.permute.xlu0 %65  }
  0x85   :  { %68 = vst.msk [vmem:[#allocation0] ss:$8 sm:$0x3] %vm67_vm9, %v66_v24   ;;  %v73_v25 = vpop.permute.xlu1 %72  }
  0x86   :  { %75 = vst.msk [vmem:[#allocation0] ss:$8 sm:$0x3] %vm74_vm10, %v73_v25  }
  0x88   :  { %v80_v26 = vpop.permute.xlu0 %79  }
  0x89   :  { %82 = vst.msk [vmem:[#allocation0] ss:$8 sm:$0x3] %vm81_vm11, %v80_v26   ;;  %v87_v27 = vpop.permute.xlu1 %86  }
  0x8a   :  { %89 = vst.msk [vmem:[#allocation0] ss:$8 sm:$0x3] %vm88_vm12, %v87_v27  }
  0x8c   :  { %v94_v28 = vpop.permute.xlu0 %93  }
  0x8d   :  { %96 = vst.msk [vmem:[#allocation0] ss:$8 sm:$0x3] %vm95_vm13, %v94_v28   ;;  %v101_v29 = vpop.permute.xlu1 %100  }
  0x8e   :  { %103 = vst.msk [vmem:[#allocation0] ss:$8 sm:$0x3] %vm102_vm14, %v101_v29  }
  0x90   :  { %v108_v30 = vpop.permute.xlu0 %107  }
  0x91   :  { %110 = vst.msk [vmem:[#allocation0] ss:$8 sm:$0x3] %vm109_vm15, %v108_v30  }
  0x98   :  { %v115_v31 = vld [vmem:[#allocation0] sm:$0x1]  ;;  %v120_v32 = vld [vmem:[#allocation0 + $0x8] sm:$0x1] }
  0x99   :  { %118 = vst [vmem:[%s236_s1] sm:$0x1] %v115_v31  ;;  %140 = vst [vmem:[%s236_s1 + $0x1] sm:$0x1] %v120_v32 }

// kernel: tile.23
= control target key start
LH: loop header
LB: loop body
LE: loop exit
PB: predicated region body
PF: predicated region fallthrough
CT: control target
= control target key end

     0   :  { %s40_s0 = inlined_call_operand.vmem [shape: f32[4], index: 0, kind: input, shape index: {}]   ;;  %s41_s1 = inlined_call_operand.vmem [shape: f32[32,4], index: 1, kind: output, shape index: {}]  }
   0x1   :  { %v4_v0 = vld [vmem:[%s40_s0] ss:$0 sm:$0xff] }
   0x2   :  { %5 = vst [vmem:[%s41_s1] sm:$0xff] %v4_v0  ;;  %12 = vst [vmem:[%s41_s1 + $0x8] sm:$0xff] %v4_v0 }
   0x3   :  { %13 = vst [vmem:[%s41_s1 + $0x10] sm:$0xff] %v4_v0  ;;  %14 = vst [vmem:[%s41_s1 + $0x18] sm:$0xff] %v4_v0 }

// kernel: tile.24
= control target key start
LH: loop header
LB: loop body
LE: loop exit
PB: predicated region body
PF: predicated region fallthrough
CT: control target
= control target key end

     0   :  { %s261_s10 = smov 124   ;;  %s262_s11 = smov 116   ;;  %vm3_vm0 = vcmask 31744   ;;  %vm9_vm1 = vcmask 1048544   ;;  %vm15_vm2 = vcmask 1015744   ;;  %vm21_vm3 = vcmask 982944   ;;  %s401_s0 = inlined_call_operand.vmem [shape: f32[32,4], index: 0, kind: input, shape index: {}]   ;;  %s402_s1 = inlined_call_operand.vmem [shape: f32[1,128], index: 1, kind: output, shape index: {}]  }
   0x1   :  { %v199_v0 = vld [vmem:[%s401_s0 + $0x1f] sm:$0x1]   ;;  %v201_v1 = vld [vmem:[%s401_s0 + $0x1d] sm:$0x1]   ;;  %v200_v2 = vld [vmem:[%s401_s0 + $0x1e] sm:$0x1]  }
   0x2   :  { %7 = vrot.lane.b32.xlu0 %v199_v0, %s261_s10  ;;  %19 = vrot.lane.b32.xlu1 %v201_v1, %s262_s11  ;;  %v202_v3 = vld [vmem:[%s401_s0 + $0x1c] sm:$0x1]   ;;  %s263_s16 = smov 120   ;;  %s264_s17 = smov 112   ;;  %v203_v4 = vld [vmem:[%s401_s0 + $0x1b] sm:$0x1]  }
   0x3   :  { %v204_v5 = vld [vmem:[%s401_s0 + $0x1a] sm:$0x1]   ;;  %s265_s22 = smov 108   ;;  %s266_s23 = smov 104   ;;  %v205_v6 = vld [vmem:[%s401_s0 + $0x19] sm:$0x1]  }
   0x4   :  { %v206_v7 = vld [vmem:[%s401_s0 + $0x18] sm:$0x1]   ;;  %s267_s28 = smov 100   ;;  %s268_s29 = smov 96   ;;  %v207_v8 = vld [vmem:[%s401_s0 + $0x17] sm:$0x1]  }
   0x5   :  { %v208_v9 = vld [vmem:[%s401_s0 + $0x16] sm:$0x1]   ;;  %v2_v10 = vld [vmem:[%s401_s0] sm:$0x1]   ;;  %s269_s7 = smov 92   ;;  %s270_s8 = smov 88  }
   0x6   :  { %13 = vrot.lane.b32.xlu0 %v200_v2, %s263_s16  ;;  %25 = vrot.lane.b32.xlu1 %v202_v3, %s264_s17  ;;  %4 = vst.msk [vmem:[#allocation0] sm:$0x1] %vm3_vm0, %v2_v10   ;;  %v209_v11 = vld [vmem:[%s401_s0 + $0x15] sm:$0x1]   ;;  %v210_v12 = vld [vmem:[%s401_s0 + $0x14] sm:$0x1]  }
   0x7   :  { %s271_s13 = smov 84   ;;  %s272_s14 = smov 80   ;;  %v211_v13 = vld [vmem:[%s401_s0 + $0x13] sm:$0x1]   ;;  %v212_v14 = vld [vmem:[%s401_s0 + $0x12] sm:$0x1]  }
   0x8   :  { %s273_s19 = smov 76   ;;  %s274_s20 = smov 72   ;;  %v213_v15 = vld [vmem:[%s401_s0 + $0x11] sm:$0x1]   ;;  %v214_v16 = vld [vmem:[%s401_s0 + $0x10] sm:$0x1]  }
   0x9   :  { %s275_s25 = smov 68   ;;  %s276_s26 = smov 64   ;;  %v215_v17 = vld [vmem:[%s401_s0 + $0xf] sm:$0x1]   ;;  %v216_v18 = vld [vmem:[%s401_s0 + $0xe] sm:$0x1]  }
   0xa   :  { %31 = vrot.lane.b32.xlu0 %v203_v4, %s265_s22  ;;  %37 = vrot.lane.b32.xlu1 %v204_v5, %s266_s23  ;;  %s277_s2 = smov 60   ;;  %s278_s3 = smov 56   ;;  %v217_v19 = vld [vmem:[%s401_s0 + $0xd] sm:$0x1]   ;;  %v218_v20 = vld [vmem:[%s401_s0 + $0xc] sm:$0x1]  }
   0xb   :  { %s280_s9 = smov 48   ;;  %v219_v21 = vld [vmem:[%s401_s0 + $0xb] sm:$0x1]   ;;  %v220_v22 = vld [vmem:[%s401_s0 + $0xa] sm:$0x1]   ;;  %s282_s15 = smov 40  }
   0xc   :  { %v221_v23 = vld [vmem:[%s401_s0 + $0x9] sm:$0x1]   ;;  %v222_v24 = vld [vmem:[%s401_s0 + $0x8] sm:$0x1]   ;;  %s284_s21 = smov 32   ;;  %s286_s27 = smov 24  }
   0xd   :  { %v223_v25 = vld [vmem:[%s401_s0 + $0x7] sm:$0x1]   ;;  %v224_v26 = vld [vmem:[%s401_s0 + $0x6] sm:$0x1]   ;;  %v225_v27 = vld [vmem:[%s401_s0 + $0x5] sm:$0x1]  }
   0xe   :  { %43 = vrot.lane.b32.xlu0 %v205_v6, %s267_s28  ;;  %49 = vrot.lane.b32.xlu1 %v206_v7, %s268_s29  ;;  %v226_v28 = vld [vmem:[%s401_s0 + $0x4] sm:$0x1]   ;;  %s288_s4 = smov 16   ;;  %v227_v29 = vld [vmem:[%s401_s0 + $0x3] sm:$0x1]   ;;  %s290_s10 = smov 8  }
   0xf   :  { %v228_v30 = vld [vmem:[%s401_s0 + $0x2] sm:$0x1]   ;;  %v229_v31 = vld [vmem:[%s401_s0 + $0x1] sm:$0x1]   ;;  %s291_s0 = smov 4   ;;  %vm27_vm4 = vcmask 950144  }
  0x10   :  { %vm33_vm5 = vcmask 917344   ;;  %vm39_vm6 = vcmask 884544   ;;  %vm45_vm7 = vcmask 851744   ;;  %vm51_vm8 = vcmask 818944  }
  0x11   :  { %vm57_vm9 = vcmask 786144   ;;  %vm63_vm10 = vcmask 753344   ;;  %vm69_vm11 = vcmask 720544   ;;  %vm75_vm12 = vcmask 687744  }
  0x12   :  { %55 = vrot.lane.b32.xlu0 %v207_v8, %s269_s7  ;;  %61 = vrot.lane.b32.xlu1 %v208_v9, %s270_s8  ;;  %s279_s8 = smov 52   ;;  %vm81_vm13 = vcmask 654944   ;;  %vm87_vm14 = vcmask 622144   ;;  %vm93_vm15 = vcmask 589344   ;;  %vm99_vm0 = vcmask 556544  }
  0x16   :  { %67 = vrot.lane.b32.xlu0 %v209_v11, %s271_s13  ;;  %73 = vrot.lane.b32.xlu1 %v210_v12, %s272_s14  ;;  %s281_s14 = smov 44  }
  0x1a   :  { %79 = vrot.lane.b32.xlu0 %v211_v13, %s273_s19  ;;  %85 = vrot.lane.b32.xlu1 %v212_v14, %s274_s20  ;;  %s283_s20 = smov 36  }
  0x1e   :  { %91 = vrot.lane.b32.xlu0 %v213_v15, %s275_s25  ;;  %97 = vrot.lane.b32.xlu1 %v214_v16, %s276_s26  ;;  %s285_s26 = smov 28  }
  0x22   :  { %103 = vrot.lane.b32.xlu0 %v215_v17, %s277_s2  ;;  %109 = vrot.lane.b32.xlu1 %v216_v18, %s278_s3  ;;  %s287_s3 = smov 20  }
  0x26   :  { %115 = vrot.lane.b32.xlu0 %v217_v19, %s279_s8  ;;  %121 = vrot.lane.b32.xlu1 %v218_v20, %s280_s9  ;;  %s289_s9 = smov 12  }
  0x2a   :  { %127 = vrot.lane.b32.xlu0 %v219_v21, %s281_s14  ;;  %133 = vrot.lane.b32.xlu1 %v220_v22, %s282_s15 }
  0x2e   :  { %139 = vrot.lane.b32.xlu0 %v221_v23, %s283_s20  ;;  %145 = vrot.lane.b32.xlu1 %v222_v24, %s284_s21 }
  0x32   :  { %151 = vrot.lane.b32.xlu0 %v223_v25, %s285_s26  ;;  %157 = vrot.lane.b32.xlu1 %v224_v26, %s286_s27 }
  0x36   :  { %163 = vrot.lane.b32.xlu0 %v225_v27, %s287_s3  ;;  %169 = vrot.lane.b32.xlu1 %v226_v28, %s288_s4 }
  0x3a   :  { %175 = vrot.lane.b32.xlu0 %v227_v29, %s289_s9  ;;  %181 = vrot.lane.b32.xlu1 %v228_v30, %s290_s10 }
  0x3e   :  { %187 = vrot.lane.b32.xlu0 %v229_v31, %s291_s0 }
  0x74   :  { %v8_v32 = vpop.permute.xlu0 %7   ;;  %v20_v33 = vpop.permute.xlu1 %19  }
  0x75   :  { %10 = vst.msk [vmem:[#allocation0] sm:$0x1] %vm9_vm1, %v8_v32   ;;  %vm105_vm1 = vcmask 523744  }
  0x78   :  { %v14_v34 = vpop.permute.xlu0 %13   ;;  %v26_v35 = vpop.permute.xlu1 %25  }
  0x79   :  { %16 = vst.msk [vmem:[#allocation0] sm:$0x1] %vm15_vm2, %v14_v34   ;;  %vm111_vm2 = vcmask 490944  }
  0x7a   :  { %22 = vst.msk [vmem:[#allocation0] sm:$0x1] %vm21_vm3, %v20_v33   ;;  %vm117_vm3 = vcmask 458144  }
  0x7b   :  { %28 = vst.msk [vmem:[#allocation0] sm:$0x1] %vm27_vm4, %v26_v35   ;;  %vm123_vm4 = vcmask 425344  }
  0x7c   :  { %v32_v36 = vpop.permute.xlu0 %31   ;;  %v38_v37 = vpop.permute.xlu1 %37  }
  0x7d   :  { %34 = vst.msk [vmem:[#allocation0] sm:$0x1] %vm33_vm5, %v32_v36   ;;  %vm129_vm5 = vcmask 392544  }
  0x7e   :  { %40 = vst.msk [vmem:[#allocation0] sm:$0x1] %vm39_vm6, %v38_v37   ;;  %vm135_vm6 = vcmask 359744  }
  0x80   :  { %v44_v38 = vpop.permute.xlu0 %43   ;;  %v50_v39 = vpop.permute.xlu1 %49  }
  0x81   :  { %46 = vst.msk [vmem:[#allocation0] sm:$0x1] %vm45_vm7, %v44_v38   ;;  %vm141_vm7 = vcmask 326944  }
  0x82   :  { %52 = vst.msk [vmem:[#allocation0] sm:$0x1] %vm51_vm8, %v50_v39   ;;  %vm147_vm8 = vcmask 294144  }
  0x84   :  { %v56_v40 = vpop.permute.xlu0 %55   ;;  %v62_v41 = vpop.permute.xlu1 %61  }
  0x85   :  { %58 = vst.msk [vmem:[#allocation0] sm:$0x1] %vm57_vm9, %v56_v40   ;;  %vm153_vm9 = vcmask 261344  }
  0x86   :  { %64 = vst.msk [vmem:[#allocation0] sm:$0x1] %vm63_vm10, %v62_v41   ;;  %vm159_vm10 = vcmask 228544  }
  0x88   :  { %v68_v42 = vpop.permute.xlu0 %67   ;;  %v74_v43 = vpop.permute.xlu1 %73  }
  0x89   :  { %70 = vst.msk [vmem:[#allocation0] sm:$0x1] %vm69_vm11, %v68_v42   ;;  %vm165_vm11 = vcmask 195744  }
  0x8a   :  { %76 = vst.msk [vmem:[#allocation0] sm:$0x1] %vm75_vm12, %v74_v43   ;;  %vm171_vm12 = vcmask 162944  }
  0x8c   :  { %v80_v44 = vpop.permute.xlu0 %79   ;;  %v86_v45 = vpop.permute.xlu1 %85  }
  0x8d   :  { %82 = vst.msk [vmem:[#allocation0] sm:$0x1] %vm81_vm13, %v80_v44   ;;  %vm177_vm13 = vcmask 130144  }
  0x8e   :  { %88 = vst.msk [vmem:[#allocation0] sm:$0x1] %vm87_vm14, %v86_v45   ;;  %vm183_vm14 = vcmask 97344  }
  0x90   :  { %v92_v46 = vpop.permute.xlu0 %91   ;;  %v98_v47 = vpop.permute.xlu1 %97  }
  0x91   :  { %94 = vst.msk [vmem:[#allocation0] sm:$0x1] %vm93_vm15, %v92_v46   ;;  %vm189_vm15 = vcmask 64544  }
  0x92   :  { %100 = vst.msk [vmem:[#allocation0] sm:$0x1] %vm99_vm0, %v98_v47  }
  0x94   :  { %v104_v48 = vpop.permute.xlu0 %103   ;;  %v110_v49 = vpop.permute.xlu1 %109  }
  0x95   :  { %106 = vst.msk [vmem:[#allocation0] sm:$0x1] %vm105_vm1, %v104_v48  }
  0x96   :  { %112 = vst.msk [vmem:[#allocation0] sm:$0x1] %vm111_vm2, %v110_v49  }
  0x98   :  { %v116_v50 = vpop.permute.xlu0 %115   ;;  %v122_v51 = vpop.permute.xlu1 %121  }
  0x99   :  { %118 = vst.msk [vmem:[#allocation0] sm:$0x1] %vm117_vm3, %v116_v50  }
  0x9a   :  { %124 = vst.msk [vmem:[#allocation0] sm:$0x1] %vm123_vm4, %v122_v51  }
  0x9c   :  { %v128_v52 = vpop.permute.xlu0 %127   ;;  %v134_v53 = vpop.permute.xlu1 %133  }
  0x9d   :  { %130 = vst.msk [vmem:[#allocation0] sm:$0x1] %vm129_vm5, %v128_v52  }
  0x9e   :  { %136 = vst.msk [vmem:[#allocation0] sm:$0x1] %vm135_vm6, %v134_v53  }
  0xa0   :  { %v140_v54 = vpop.permute.xlu0 %139   ;;  %v146_v55 = vpop.permute.xlu1 %145  }
  0xa1   :  { %142 = vst.msk [vmem:[#allocation0] sm:$0x1] %vm141_vm7, %v140_v54  }
  0xa2   :  { %148 = vst.msk [vmem:[#allocation0] sm:$0x1] %vm147_vm8, %v146_v55  }
  0xa4   :  { %v152_v56 = vpop.permute.xlu0 %151   ;;  %v158_v57 = vpop.permute.xlu1 %157  }
  0xa5   :  { %154 = vst.msk [vmem:[#allocation0] sm:$0x1] %vm153_vm9, %v152_v56  }
  0xa6   :  { %160 = vst.msk [vmem:[#allocation0] sm:$0x1] %vm159_vm10, %v158_v57  }
  0xa8   :  { %v164_v58 = vpop.permute.xlu0 %163   ;;  %v170_v59 = vpop.permute.xlu1 %169  }
  0xa9   :  { %166 = vst.msk [vmem:[#allocation0] sm:$0x1] %vm165_vm11, %v164_v58  }
  0xaa   :  { %172 = vst.msk [vmem:[#allocation0] sm:$0x1] %vm171_vm12, %v170_v59  }
  0xac   :  { %v176_v60 = vpop.permute.xlu0 %175   ;;  %v182_v61 = vpop.permute.xlu1 %181  }
  0xad   :  { %178 = vst.msk [vmem:[#allocation0] sm:$0x1] %vm177_vm13, %v176_v60  }
  0xae   :  { %184 = vst.msk [vmem:[#allocation0] sm:$0x1] %vm183_vm14, %v182_v61  }
  0xb0   :  { %v188_v62 = vpop.permute.xlu0 %187  }
  0xb1   :  { %190 = vst.msk [vmem:[#allocation0] sm:$0x1] %vm189_vm15, %v188_v62  }
  0xb8   :  { %v195_v63 = vld [vmem:[#allocation0] sm:$0x1] }
  0xb9   :  { %198 = vst [vmem:[%s402_s1] sm:$0x1] %v195_v63 }

// kernel: upsample_forward.1
= control target key start
LH: loop header
LB: loop body
LE: loop exit
PB: predicated region body
PF: predicated region fallthrough
CT: control target
= control target key end

     0   :  { %s3109_s25 = smov 0   ;;  %s4813_s0 = inlined_call_operand.vmem [shape: f32[2,16,64], index: 0, kind: input, shape index: {}]   ;;  %s4814_s1 = inlined_call_operand.vmem [shape: f32[2,16,64], index: 1, kind: input, shape index: {}]   ;;  %s4815_s2 = inlined_call_operand.vmem [shape: f32[32,16], index: 2, kind: input, shape index: {}]   ;;  %s4816_s3 = inlined_call_operand.vmem [shape: f32[64,128], index: 3, kind: input, shape index: {}]   ;;  %s4817_s4 = inlined_call_operand.vmem [shape: f32[384,256], index: 4, kind: input, shape index: {}]   ;;  %s4818_s5 = inlined_call_operand.vmem [shape: f32[384,256], index: 5, kind: input, shape index: {}]   ;;  %s4819_s6 = inlined_call_operand.vmem [shape: f32[768,128], index: 6, kind: input, shape index: {}]   ;;  %s4820_s7 = inlined_call_operand.vmem [shape: f32[768,128], index: 7, kind: input, shape index: {}]   ;;  %s4821_s8 = inlined_call_operand.vmem [shape: f32[1,128], index: 8, kind: input, shape index: {}]   ;;  %s4822_s9 = inlined_call_operand.vmem [shape: f32[1,256], index: 9, kind: input, shape index: {}]   ;;  %s4823_s10 = inlined_call_operand.vmem [shape: f32[1,256], index: 10, kind: input, shape index: {}]   ;;  %s4824_s11 = inlined_call_operand.vmem [shape: f32[1,128], index: 11, kind: input, shape index: {}]   ;;  %s4825_s12 = inlined_call_operand.vmem [shape: f32[2,32,128], index: 12, kind: output, shape index: {0}]   ;;  %s4826_s13 = inlined_call_operand.vmem [shape: f32[2,32,128], index: 13, kind: output, shape index: {1}]  }
   0x1 LB: > { %s2582_s26 = sadd.s32 4294967295, %s3035_s25   ;;  %p2586_p0 = scmp.ge.s32.totalorder %s3035_s25, 1  ;;  %s3035_s25 = sphi %s3109_s25, %s24_s25  }
   0x2   : > { %p400_p1 = scmp.lt.s32.totalorder %s3035_s25, 3 }
   0x4   : > { %p401_p2 = pnand %p2586_p0, %p400_p1 }
   0x5   : > { %p454_p3 = scmp.lt.s32.totalorder (!%p401_p2), %s2582_s26, 1 }
   0x6   : > { %404 = sbr.rel (%p401_p2) target bundleno = 1261 (0x4ed), region = 68 }
   0xb   : > { %v489_v0 = vld [vmem:[%s4816_s3 + $0x38] sm:$0xff]  ;;  %v488_v1 = vld [vmem:[%s4816_s3 + $0x30] sm:$0xff]  ;;  %v487_v2 = vld [vmem:[%s4816_s3 + $0x28] sm:$0xff]  ;;  %s4830_s26 = smov (!%p454_p3, %s2582_s26), 1  ;;  %vm490_vm0 = vcmask 523264   ;;  %vm572_vm1 = vcmask 130048  }
   0xc   : > { %2937 = vmatprep.subr.mxu0 %v489_v0  ;;  %v486_v3 = vld [vmem:[%s4816_s3 + $0x20] sm:$0xff]  ;;  %s2637_s18 = sshll.u32 %s4830_s26, 4  ;;  %v485_v4 = vld [vmem:[%s4816_s3 + $0x18] sm:$0xff]  ;;  %v484_v6 = vld [vmem:[%s4816_s3 + $0x10] sm:$0xff]  ;;  %vm1068_vm7 = vcmask 1040384   ;;  %vm1081_vm12 = vcmask 1046528  }
   0xd   : > { %2938 = vmatpush3.msra.mxu0 %v489_v0  ;;  %s458_s21 = scalar_lea.vmem %s4813_s0, %s2637_s18  ;;  %v483_v7 = vld [vmem:[%s4816_s3 + $0x8] sm:$0xff]  ;;  %v482_v8 = vld [vmem:[%s4816_s3] sm:$0xff]  ;;  %v3164_v14 = vld [vmem:[%s4815_s2 + $0x10] sm:$0xff]  ;;  %s463_s24 = scalar_lea.vmem %s4814_s1, %s2637_s18 }
   0xe   : > { %2939 = vmatprep.subr.mxu0 %v488_v1  ;;  %v474_v5 = vld [vmem:[%s458_s21] sm:$0xff]  ;;  %v475_v9 = vld [vmem:[%s458_s21 + $0x8] sm:$0xff]  ;;  %v3178_v15 = vld [vmem:[%s4815_s2 + $0x18] sm:$0xff]  ;;  %s2639_s21 = sshll.u32 %s4830_s26, 5 }
   0xf   : > { %2940 = vmatpush3.msra.mxu0 %v488_v1  ;;  %2953 = vmatprep.mubr.msk.f32.mxu0 %vm490_vm0, %v474_v5  ;;  %v478_v10 = vld [vmem:[%s4815_s2] sm:$0xff]  ;;  %v3159_v13 = vld [vmem:[%s4815_s2 + $0x8] sm:$0xff]  ;;  %v962_v18 = vld [vmem:[%s4817_s4 + $0x2f8] sm:$0xff]  ;;  %s468_s30 = scalar_lea.vmem %s4825_s12, %s2639_s21 }
  0x10   : > { %2941 = vmatprep.subr.mxu0 %v487_v2  ;;  %2960 = vmatprep.mubr.msk.f32.mxu1 %vm572_vm1, %v478_v10  ;;  %v476_v16 = vld [vmem:[%s463_s24] sm:$0xff]  ;;  %v477_v17 = vld [vmem:[%s463_s24 + $0x8] sm:$0xff]  ;;  %v961_v19 = vld [vmem:[%s4817_s4 + $0x2f0] sm:$0xff]  ;;  %s4772_s24 = scalar_lea.vmem %s4826_s13, %s2639_s21 }
  0x11   : > { %2942 = vmatpush3.msra.mxu0 %v487_v2  ;;  %v960_v20 = vld [vmem:[%s4817_s4 + $0x2e8] sm:$0xff]  ;;  %v959_v21 = vld [vmem:[%s4817_s4 + $0x2e0] sm:$0xff]  ;;  %v958_v22 = vld [vmem:[%s4817_s4 + $0x2d8] sm:$0xff] }
  0x12   : > { %2943 = vmatprep.subr.mxu0 %v486_v3  ;;  %v957_v23 = vld [vmem:[%s4817_s4 + $0x2d0] sm:$0xff]  ;;  %v956_v24 = vld [vmem:[%s4817_s4 + $0x2c8] sm:$0xff]  ;;  %v955_v25 = vld [vmem:[%s4817_s4 + $0x2c0] sm:$0xff] }
  0x13   : > { %2944 = vmatpush3.msra.mxu0 %v486_v3  ;;  %v954_v26 = vld [vmem:[%s4817_s4 + $0x2b8] sm:$0xff]  ;;  %v953_v27 = vld [vmem:[%s4817_s4 + $0x2b0] sm:$0xff]  ;;  %v952_v28 = vld [vmem:[%s4817_s4 + $0x2a8] sm:$0xff] }
  0x14   : > { %2945 = vmatprep.subr.mxu0 %v485_v4  ;;  %v951_v29 = vld [vmem:[%s4817_s4 + $0x2a0] sm:$0xff]  ;;  %v950_v30 = vld [vmem:[%s4817_s4 + $0x298] sm:$0xff]  ;;  %v949_v31 = vld [vmem:[%s4817_s4 + $0x290] sm:$0xff] }
  0x15   : > { %2946 = vmatpush3.msra.mxu0 %v485_v4  ;;  %v948_v32 = vld [vmem:[%s4817_s4 + $0x288] sm:$0xff]  ;;  %v947_v33 = vld [vmem:[%s4817_s4 + $0x280] sm:$0xff]  ;;  %v946_v34 = vld [vmem:[%s4817_s4 + $0x278] sm:$0xff] }
  0x16   : > { %2947 = vmatprep.subr.mxu0 %v484_v6  ;;  %v945_v35 = vld [vmem:[%s4817_s4 + $0x270] sm:$0xff]  ;;  %v944_v36 = vld [vmem:[%s4817_s4 + $0x268] sm:$0xff]  ;;  %v943_v37 = vld [vmem:[%s4817_s4 + $0x260] sm:$0xff] }
  0x17   : > { %2948 = vmatpush3.msra.mxu0 %v484_v6  ;;  %v942_v38 = vld [vmem:[%s4817_s4 + $0x258] sm:$0xff]  ;;  %v941_v39 = vld [vmem:[%s4817_s4 + $0x250] sm:$0xff]  ;;  %v940_v40 = vld [vmem:[%s4817_s4 + $0x248] sm:$0xff] }
  0x18   : > { %2949 = vmatprep.subr.mxu0 %v483_v7  ;;  %v898_v47 = vld [vmem:[%s4817_s4 + $0xf8] sm:$0xff]  ;;  %v897_v48 = vld [vmem:[%s4817_s4 + $0xf0] sm:$0xff]  ;;  %v896_v49 = vld [vmem:[%s4817_s4 + $0xe8] sm:$0xff] }
  0x19   : > { %2950 = vmatpush3.msra.mxu0 %v483_v7  ;;  %v895_v50 = vld [vmem:[%s4817_s4 + $0xe0] sm:$0xff]  ;;  %v894_v51 = vld [vmem:[%s4817_s4 + $0xd8] sm:$0xff]  ;;  %v893_v52 = vld [vmem:[%s4817_s4 + $0xd0] sm:$0xff] }
  0x1a   : > { %2951 = vmatprep.subr.mxu0 %v482_v8  ;;  %v892_v53 = vld [vmem:[%s4817_s4 + $0xc8] sm:$0xff]  ;;  %v891_v54 = vld [vmem:[%s4817_s4 + $0xc0] sm:$0xff]  ;;  %v890_v55 = vld [vmem:[%s4817_s4 + $0xb8] sm:$0xff] }
  0x1b   : > { %2952 = vmatpush3.msra.mxu0 %v482_v8  ;;  %v889_v56 = vld [vmem:[%s4817_s4 + $0xb0] sm:$0xff]  ;;  %v888_v57 = vld [vmem:[%s4817_s4 + $0xa8] sm:$0xff]  ;;  %v887_v58 = vld [vmem:[%s4817_s4 + $0xa0] sm:$0xff] }
  0x1c   : > { %2954 = vmatmul.mubr.msk.f32.vlgmr.msra.gmra.mxu0 %vm490_vm0, %v475_v9  ;;  %v886_v59 = vld [vmem:[%s4817_s4 + $0x98] sm:$0xff]  ;;  %v885_v60 = vld [vmem:[%s4817_s4 + $0x90] sm:$0xff]  ;;  %v884_v61 = vld [vmem:[%s4817_s4 + $0x88] sm:$0xff] }
  0x1d   : > { %2989 = vmatprep.mubr.msk.f32.mxu0 %vm572_vm1, %v478_v10  ;;  %v883_v62 = vld [vmem:[%s4817_s4 + $0x80] sm:$0xff]  ;;  %v882_v63 = vld [vmem:[%s4817_s4 + $0x78] sm:$0xff]  ;;  %v876_v5 = vld [vmem:[%s4817_s4 + $0x48] sm:$0xff] }
  0x1e   : > { %v872_v9 = vld [vmem:[%s4817_s4 + $0x28] sm:$0xff]  ;;  %v871_v10 = vld [vmem:[%s4817_s4 + $0x20] sm:$0xff]  ;;  %vm3538_vm10 = vmneg %vm1068_vm7 }
  0xdc   : > { %v2955_v11 = vpop.f32.mrf.mxu0 }
  0xdd   : > { %2956 = vmatprep.subr.mxu1 %v2955_v11 }
  0xde   : > { %v563_v12 = vpop.f32.mrf.mxu0  ;;  %2957 = vmatpush3.msra.mxu1 %v2955_v11  ;;  %v870_v11 = vld [vmem:[%s4817_s4 + $0x18] sm:$0xff] }
  0xdf   : > { %2958 = vmatprep.subr.mxu1 %v563_v12 }
  0xe0   : > { %2959 = vmatpush3.msra.mxu1 %v563_v12  ;;  %v869_v12 = vld [vmem:[%s4817_s4 + $0x10] sm:$0xff] }
  0xe1   : > { %2961 = vmatmul.mubr.msk.f32.vlgmr.msra.gmra.mxu1 %vm572_vm1, %v3159_v13  ;;  %2966 = vmatprep.subr.mxu1 %v489_v0 }
  0xe2   : > { %2967 = vmatpush3.msra.mxu1 %v489_v0  ;;  %2963 = vmatprep.mubr.msk.f32.mxu1 %vm572_vm1, %v3164_v14  ;;  %v881_v0 = vld [vmem:[%s4817_s4 + $0x70] sm:$0xff] }
  0xe3   : > { %2968 = vmatprep.subr.mxu1 %v488_v1 }
  0xe4   : > { %2969 = vmatpush3.msra.mxu1 %v488_v1  ;;  %v880_v1 = vld [vmem:[%s4817_s4 + $0x68] sm:$0xff] }
  0xe5   : > { %2970 = vmatprep.subr.mxu1 %v487_v2  ;;  %2964 = vmatmul.mubr.msk.f32.gmra.mxu1 %vm572_vm1, %v3178_v15 }
  0xe6   : > { %2971 = vmatpush3.msra.mxu1 %v487_v2  ;;  %2982 = vmatprep.mubr.msk.f32.mxu1 %vm490_vm0, %v476_v16  ;;  %v879_v2 = vld [vmem:[%s4817_s4 + $0x60] sm:$0xff]  ;;  %v929_v16 = vld [vmem:[%s4817_s4 + $0x1f0] sm:$0xff] }
  0xe7   : > { %2972 = vmatprep.subr.mxu1 %v486_v3 }
  0xe8   : > { %2973 = vmatpush3.msra.mxu1 %v486_v3  ;;  %v878_v3 = vld [vmem:[%s4817_s4 + $0x58] sm:$0xff] }
  0xe9   : > { %2974 = vmatprep.subr.mxu1 %v485_v4 }
  0xea   : > { %2975 = vmatpush3.msra.mxu1 %v485_v4  ;;  %v877_v4 = vld [vmem:[%s4817_s4 + $0x50] sm:$0xff] }
  0xeb   : > { %2976 = vmatprep.subr.mxu1 %v484_v6 }
  0xec   : > { %2977 = vmatpush3.msra.mxu1 %v484_v6  ;;  %v875_v6 = vld [vmem:[%s4817_s4 + $0x40] sm:$0xff] }
  0xed   : > { %2978 = vmatprep.subr.mxu1 %v483_v7 }
  0xee   : > { %2979 = vmatpush3.msra.mxu1 %v483_v7  ;;  %v874_v7 = vld [vmem:[%s4817_s4 + $0x38] sm:$0xff] }
  0xef   : > { %2980 = vmatprep.subr.mxu1 %v482_v8 }
  0xf0   : > { %2981 = vmatpush3.msra.mxu1 %v482_v8  ;;  %v873_v8 = vld [vmem:[%s4817_s4 + $0x30] sm:$0xff] }
  0xf1   : > { %2983 = vmatmul.mubr.msk.f32.vlgmr.msra.gmra.mxu1 %vm490_vm0, %v477_v17  ;;  %1183 = vmatprep.subr.mxu1 %v962_v18  ;;  %v928_v17 = vld [vmem:[%s4817_s4 + $0x1e8] sm:$0xff]  ;;  %v927_v18 = vld [vmem:[%s4817_s4 + $0x1e0] sm:$0xff] }
  0xf2   : > { %1184 = vmatpush1.msra.mxu1 %v961_v19  ;;  %v926_v19 = vld [vmem:[%s4817_s4 + $0x1d8] sm:$0xff] }
  0xf3   : > { %1185 = vmatprep.subr.mxu1 %v960_v20  ;;  %v925_v20 = vld [vmem:[%s4817_s4 + $0x1d0] sm:$0xff] }
  0xf4   : > { %1186 = vmatpush1.msra.mxu1 %v959_v21  ;;  %v924_v21 = vld [vmem:[%s4817_s4 + $0x1c8] sm:$0xff] }
  0xf5   : > { %1187 = vmatprep.subr.mxu1 %v958_v22  ;;  %v923_v22 = vld [vmem:[%s4817_s4 + $0x1c0] sm:$0xff] }
  0xf6   : > { %1188 = vmatpush1.msra.mxu1 %v957_v23  ;;  %v922_v23 = vld [vmem:[%s4817_s4 + $0x1b8] sm:$0xff] }
  0xf7   : > { %1189 = vmatprep.subr.mxu1 %v956_v24  ;;  %v921_v24 = vld [vmem:[%s4817_s4 + $0x1b0] sm:$0xff] }
  0xf8   : > { %1190 = vmatpush1.msra.mxu1 %v955_v25  ;;  %v920_v25 = vld [vmem:[%s4817_s4 + $0x1a8] sm:$0xff] }
  0xf9   : > { %1191 = vmatprep.subr.mxu1 %v954_v26  ;;  %v919_v26 = vld [vmem:[%s4817_s4 + $0x1a0] sm:$0xff] }
  0xfa   : > { %1192 = vmatpush1.msra.mxu1 %v953_v27  ;;  %v918_v27 = vld [vmem:[%s4817_s4 + $0x198] sm:$0xff] }
  0xfb   : > { %1193 = vmatprep.subr.mxu1 %v952_v28  ;;  %v917_v28 = vld [vmem:[%s4817_s4 + $0x190] sm:$0xff] }
  0xfc   : > { %1194 = vmatpush1.msra.mxu1 %v951_v29  ;;  %v916_v29 = vld [vmem:[%s4817_s4 + $0x188] sm:$0xff] }
  0xfd   : > { %1195 = vmatprep.subr.mxu1 %v950_v30  ;;  %v915_v30 = vld [vmem:[%s4817_s4 + $0x180] sm:$0xff] }
  0xfe   : > { %1196 = vmatpush1.msra.mxu1 %v949_v31  ;;  %v914_v31 = vld [vmem:[%s4817_s4 + $0x178] sm:$0xff] }
  0xff   : > { %1197 = vmatprep.subr.mxu1 %v948_v32  ;;  %v913_v32 = vld [vmem:[%s4817_s4 + $0x170] sm:$0xff] }
 0x100   : > { %1198 = vmatpush1.msra.mxu1 %v947_v33  ;;  %v912_v33 = vld [vmem:[%s4817_s4 + $0x168] sm:$0xff] }
 0x101   : > { %1199 = vmatprep.subr.mxu1 %v946_v34  ;;  %v911_v34 = vld [vmem:[%s4817_s4 + $0x160] sm:$0xff] }
 0x102   : > { %1200 = vmatpush1.msra.mxu1 %v945_v35  ;;  %v910_v35 = vld [vmem:[%s4817_s4 + $0x158] sm:$0xff] }
 0x103   : > { %1201 = vmatprep.subr.mxu1 %v944_v36  ;;  %v909_v36 = vld [vmem:[%s4817_s4 + $0x150] sm:$0xff] }
 0x104   : > { %1202 = vmatpush1.msra.mxu1 %v943_v37  ;;  %v908_v37 = vld [vmem:[%s4817_s4 + $0x148] sm:$0xff] }
 0x105   : > { %1203 = vmatprep.subr.mxu1 %v942_v38  ;;  %v907_v38 = vld [vmem:[%s4817_s4 + $0x140] sm:$0xff] }
 0x106   : > { %1204 = vmatpush1.msra.mxu1 %v941_v39  ;;  %v906_v39 = vld [vmem:[%s4817_s4 + $0x138] sm:$0xff] }
 0x107   : > { %1205 = vmatprep.subr.mxu1 %v940_v40  ;;  %v939_v40 = vld [vmem:[%s4817_s4 + $0x240] sm:$0xff] }
 0x108   : > { %1206 = vmatpush1.msra.mxu1 %v939_v40 }
 0x1a1   : > { %v3253_v41 = vpop.f32.mrf.mxu1 }
 0x1a2   : > { %vm850_vm2 = vcmp.ge.f32.partialorder %v3253_v41, 0.0 }
 0x1a3   : > { %v3255_v42 = vpop.f32.mrf.mxu1 }
 0x1a4   : > { %vm849_vm3 = vcmp.ge.f32.partialorder %v3255_v42, 0.0 }
 0x1a5   : > { %v3257_v43 = vpop.f32.mrf.mxu1 }
 0x1a6   : > { %vm852_vm5 = vcmp.ge.f32.partialorder %v3257_v43, 0.0 }
 0x1a7   : > { %v3259_v44 = vpop.f32.mrf.mxu1 }
 0x1a8   : > { %vm851_vm8 = vcmp.ge.f32.partialorder %v3259_v44, 0.0 }
 0x1b1   : > { %v2984_v45 = vpop.f32.mrf.mxu1 }
 0x1b2   : > { %2985 = vmatprep.subr.mxu0 %v2984_v45 }
 0x1b3   : > { %v742_v46 = vpop.f32.mrf.mxu1  ;;  %2986 = vmatpush3.msra.mxu0 %v2984_v45  ;;  %v905_v45 = vld [vmem:[%s4817_s4 + $0x130] sm:$0xff] }
 0x1b4   : > { %2987 = vmatprep.subr.mxu0 %v742_v46 }
 0x1b5   : > { %2988 = vmatpush3.msra.mxu0 %v742_v46  ;;  %v938_v46 = vld [vmem:[%s4817_s4 + $0x238] sm:$0xff] }
 0x1b6   : > { %2990 = vmatmul.mubr.msk.f32.vlgmr.msra.gmra.mxu0 %vm572_vm1, %v3159_v13  ;;  %1094 = vmatprep.subr.mxu0 %v898_v47  ;;  %v868_v13 = vld [vmem:[%s4817_s4 + $0x8] sm:$0xff] }
 0x1b7   : > { %2992 = vmatprep.mubr.msk.f32.mxu0 %vm572_vm1, %v3164_v14  ;;  %1095 = vmatpush1.msra.mxu0 %v897_v48  ;;  %v867_v14 = vld [vmem:[%s4817_s4] sm:$0xff]  ;;  %v904_v47 = vld [vmem:[%s4817_s4 + $0x128] sm:$0xff]  ;;  %v937_v48 = vld [vmem:[%s4817_s4 + $0x230] sm:$0xff] }
 0x1b8   : > { %1096 = vmatprep.subr.mxu0 %v896_v49  ;;  %1207 = vmatprep.subr.mxu1 %v938_v46  ;;  %v903_v49 = vld [vmem:[%s4817_s4 + $0x120] sm:$0xff] }
 0x1b9   : > { %1097 = vmatpush1.msra.mxu0 %v895_v50  ;;  %1208 = vmatpush1.msra.mxu1 %v937_v48  ;;  %v936_v50 = vld [vmem:[%s4817_s4 + $0x228] sm:$0xff] }
 0x1ba   : > { %2993 = vmatmul.mubr.msk.f32.gmra.mxu0 %vm572_vm1, %v3178_v15  ;;  %1098 = vmatprep.subr.mxu0 %v894_v51  ;;  %v930_v15 = vld [vmem:[%s4817_s4 + $0x1f8] sm:$0xff]  ;;  %v1052_v48 = vld [vmem:[%s4818_s5 + $0x2c8] sm:$0xff] }
 0x1bb   : > { %1099 = vmatpush1.msra.mxu0 %v893_v52  ;;  %1209 = vmatprep.subr.mxu1 %v936_v50  ;;  %v902_v51 = vld [vmem:[%s4817_s4 + $0x118] sm:$0xff]  ;;  %v935_v52 = vld [vmem:[%s4817_s4 + $0x220] sm:$0xff] }
 0x1bc   : > { %1100 = vmatprep.subr.mxu0 %v892_v53  ;;  %1210 = vmatpush1.msra.mxu1 %v935_v52  ;;  %v901_v53 = vld [vmem:[%s4817_s4 + $0x110] sm:$0xff]  ;;  %v1051_v52 = vld [vmem:[%s4818_s5 + $0x2c0] sm:$0xff] }
 0x1bd   : > { %1101 = vmatpush1.msra.mxu0 %v891_v54  ;;  %v934_v54 = vld [vmem:[%s4817_s4 + $0x218] sm:$0xff] }
 0x1be   : > { %1102 = vmatprep.subr.mxu0 %v890_v55  ;;  %1211 = vmatprep.subr.mxu1 %v934_v54  ;;  %v900_v55 = vld [vmem:[%s4817_s4 + $0x108] sm:$0xff] }
 0x1bf   : > { %1103 = vmatpush1.msra.mxu0 %v889_v56  ;;  %v933_v56 = vld [vmem:[%s4817_s4 + $0x210] sm:$0xff]  ;;  %v988_v54 = vld [vmem:[%s4818_s5 + $0xc8] sm:$0xff] }
 0x1c0   : > { %1104 = vmatprep.subr.mxu0 %v888_v57  ;;  %v3037_v57 = vmov 0.0   ;;  %1212 = vmatpush1.msra.mxu1 %v933_v56  ;;  %v987_v56 = vld [vmem:[%s4818_s5 + $0xc0] sm:$0xff] }
 0x1c1   : > { %1105 = vmatpush1.msra.mxu0 %v887_v58  ;;  %1247 = vmatprep.mubr.f32.mxu1 %v3037_v57  ;;  %v899_v58 = vld [vmem:[%s4817_s4 + $0x100] sm:$0xff] }
 0x1c2   : > { %1106 = vmatprep.subr.mxu0 %v886_v59  ;;  %v932_v59 = vld [vmem:[%s4817_s4 + $0x208] sm:$0xff] }
 0x1c3   : > { %1107 = vmatpush1.msra.mxu0 %v885_v60  ;;  %1213 = vmatprep.subr.mxu1 %v932_v59  ;;  %v931_v60 = vld [vmem:[%s4817_s4 + $0x200] sm:$0xff]  ;;  %v1049_v59 = vld [vmem:[%s4818_s5 + $0x2b0] sm:$0xff] }
 0x1c4   : > { %1108 = vmatprep.subr.mxu0 %v884_v61  ;;  %v1058_v61 = vld [vmem:[%s4818_s5 + $0x2f8] sm:$0xff]  ;;  %1214 = vmatpush1.msra.mxu1 %v931_v60  ;;  %v1048_v60 = vld [vmem:[%s4818_s5 + $0x2a8] sm:$0xff] }
 0x1c5   : > { %1109 = vmatpush1.msra.mxu0 %v883_v62  ;;  %v994_v62 = vld [vmem:[%s4818_s5 + $0xf8] sm:$0xff] }
 0x1c6   : > { %1110 = vmatprep.subr.mxu0 %v882_v63  ;;  %1300 = vmatprep.subr.mxu1 %v994_v62  ;;  %v2611_v63 = vld [vmem:[%s4821_s8] ss:$0 sm:$0xff] }
 0x1c7   : > { %1111 = vmatpush1.msra.mxu0 %v881_v0  ;;  %v860_v0 = vmul.f32 %v3253_v41, %v2611_v63  ;;  %v1047_v62 = vld [vmem:[%s4818_s5 + $0x2a0] sm:$0xff] }
 0x1c8   : > { %1112 = vmatprep.subr.mxu0 %v880_v1  ;;  %v859_v1 = vmul.f32 %v2611_v63, %v3255_v42 }
 0x1c9   : > { %1113 = vmatpush1.msra.mxu0 %v879_v2 }
 0x1ca   : > { %1114 = vmatprep.subr.mxu0 %v878_v3  ;;  %v864_v3 = vsel %vm850_vm2, %v3253_v41, %v860_v0  ;;  %v863_v41 = vsel %vm849_vm3, %v3255_v42, %v859_v1  ;;  %v1046_v0 = vld [vmem:[%s4818_s5 + $0x298] sm:$0xff]  ;;  %v983_v1 = vld [vmem:[%s4818_s5 + $0xa0] sm:$0xff] }
 0x1cb   : > { %1115 = vmatpush1.msra.mxu0 %v877_v4  ;;  %v862_v4 = vmul.f32 %v3257_v43, %v2611_v63 }
 0x1cc   : > { %1116 = vmatprep.subr.mxu0 %v876_v5 }
 0x1cd   : > { %1117 = vmatpush1.msra.mxu0 %v875_v6 }
 0x1ce   : > { %1118 = vmatprep.subr.mxu0 %v874_v7  ;;  %v861_v7 = vmul.f32 %v2611_v63, %v3259_v44  ;;  %v984_v63 = vld [vmem:[%s4818_s5 + $0xa8] sm:$0xff] }
 0x1cf   : > { %1119 = vmatpush1.msra.mxu0 %v873_v8 }
 0x1d0   : > { %1120 = vmatprep.subr.mxu0 %v872_v9 }
 0x1d1   : > { %1121 = vmatpush1.msra.mxu0 %v871_v10 }
 0x1d2   : > { %1122 = vmatprep.subr.mxu0 %v870_v11 }
 0x1d3   : > { %1123 = vmatpush1.msra.mxu0 %v869_v12 }
 0x1d4   : > { %1124 = vmatprep.subr.mxu0 %v868_v13  ;;  %v866_v13 = vsel %vm852_vm5, %v3257_v43, %v862_v4  ;;  %v1057_v43 = vld [vmem:[%s4818_s5 + $0x2f0] sm:$0xff] }
 0x1d5   : > { %1125 = vmatpush1.msra.mxu0 %v867_v14  ;;  %v1045_v4 = vld [vmem:[%s4818_s5 + $0x290] sm:$0xff] }
 0x1d6   : > { %1126 = vmatprep.subr.mxu0 %v930_v15 }
 0x1d7   : > { %1127 = vmatpush2.msra.mxu0 %v929_v16 }
 0x1d8   : > { %1128 = vmatprep.subr.mxu0 %v928_v17  ;;  %v865_v17 = vsel %vm851_vm8, %v3259_v44, %v861_v7  ;;  %v981_v7 = vld [vmem:[%s4818_s5 + $0x90] sm:$0xff] }
 0x1d9   : > { %1129 = vmatpush2.msra.mxu0 %v927_v18 }
 0x1da   : > { %1130 = vmatprep.subr.mxu0 %v926_v19 }
 0x1db   : > { %1131 = vmatpush2.msra.mxu0 %v925_v20 }
 0x1dc   : > { %1132 = vmatprep.subr.mxu0 %v924_v21 }
 0x1dd   : > { %1133 = vmatpush2.msra.mxu0 %v923_v22 }
 0x1de   : > { %1134 = vmatprep.subr.mxu0 %v922_v23  ;;  %v1056_v23 = vld [vmem:[%s4818_s5 + $0x2e8] sm:$0xff] }
 0x1df   : > { %1135 = vmatpush2.msra.mxu0 %v921_v24 }
 0x1e0   : > { %1136 = vmatprep.subr.mxu0 %v920_v25 }
 0x1e1   : > { %1137 = vmatpush2.msra.mxu0 %v919_v26  ;;  %v993_v26 = vld [vmem:[%s4818_s5 + $0xf0] sm:$0xff] }
 0x1e2   : > { %1138 = vmatprep.subr.mxu0 %v918_v27  ;;  %v1055_v27 = vld [vmem:[%s4818_s5 + $0x2e0] sm:$0xff] }
 0x1e3   : > { %1139 = vmatpush2.msra.mxu0 %v917_v28 }
 0x1e4   : > { %1140 = vmatprep.subr.mxu0 %v916_v29 }
 0x1e5   : > { %1141 = vmatpush2.msra.mxu0 %v915_v30 }
 0x1e6   : > { %1142 = vmatprep.subr.mxu0 %v914_v31 }
 0x1e7   : > { %1143 = vmatpush2.msra.mxu0 %v913_v32  ;;  %v992_v32 = vld [vmem:[%s4818_s5 + $0xe8] sm:$0xff] }
 0x1e8   : > { %1144 = vmatprep.subr.mxu0 %v912_v33  ;;  %v1054_v33 = vld [vmem:[%s4818_s5 + $0x2d8] sm:$0xff] }
 0x1e9   : > { %1145 = vmatpush2.msra.mxu0 %v911_v34  ;;  %v991_v34 = vld [vmem:[%s4818_s5 + $0xe0] sm:$0xff] }
 0x1ea   : > { %1146 = vmatprep.subr.mxu0 %v910_v35  ;;  %v990_v35 = vld [vmem:[%s4818_s5 + $0xd8] sm:$0xff] }
 0x1eb   : > { %1147 = vmatpush2.msra.mxu0 %v909_v36 }
 0x1ec   : > { %1148 = vmatprep.subr.mxu0 %v908_v37 }
 0x1ed   : > { %1149 = vmatpush2.msra.mxu0 %v907_v38 }
 0x1ee   : > { %1150 = vmatprep.subr.mxu0 %v906_v39  ;;  %v1053_v39 = vld [vmem:[%s4818_s5 + $0x2d0] sm:$0xff] }
 0x1ef   : > { %1151 = vmatpush2.msra.mxu0 %v905_v45 }
 0x1f0   : > { %1152 = vmatprep.subr.mxu0 %v904_v47 }
 0x1f1   : > { %1153 = vmatpush2.msra.mxu0 %v903_v49 }
 0x1f2   : > { %1154 = vmatprep.subr.mxu0 %v902_v51  ;;  %v989_v51 = vld [vmem:[%s4818_s5 + $0xd0] sm:$0xff] }
 0x1f3   : > { %1155 = vmatpush2.msra.mxu0 %v901_v53 }
 0x1f4   : > { %1156 = vmatprep.subr.mxu0 %v900_v55  ;;  %v1050_v55 = vld [vmem:[%s4818_s5 + $0x2b8] sm:$0xff] }
 0x1f5   : > { %1157 = vmatpush2.msra.mxu0 %v899_v58  ;;  %v986_v58 = vld [vmem:[%s4818_s5 + $0xb8] sm:$0xff] }
 0x1f6   : > { %1389 = vmatprep.subr.mxu0 %v1058_v61  ;;  %v985_v61 = vld [vmem:[%s4818_s5 + $0xb0] sm:$0xff] }
 0x276   : > { %v3499_v2 = vpop.f32.mrf.mxu0 }
 0x277   : > { %vm837_vm4 = vcmp.gt.f32.partialorder %v3499_v2, 0.5  ;;  %v1652_v2 = vld [vmem:[%s4819_s6 + $0x178] sm:$0xff] }
 0x278   : > { %v3509_v5 = vsel %vm837_vm4, 1.0, %v3037_v57  ;;  %v3511_v6 = vpop.f32.mrf.mxu0 }
 0x279   : > { %v1061_v8 = vmul.f32 %v3509_v5, %v864_v3  ;;  %vm836_vm6 = vcmp.gt.f32.partialorder %v3511_v6, 0.5  ;;  %v1277_v14 = vrot.slane %v3509_v5, 7  ;;  %v982_v3 = vld [vmem:[%s4818_s5 + $0x98] sm:$0xff]  ;;  %v1039_v6 = vld [vmem:[%s4818_s5 + $0x260] sm:$0xff] }
 0x27a   : > { %v3521_v9 = vsel %vm836_vm6, 1.0, %v3037_v57  ;;  %v3523_v10 = vpop.f32.mrf.mxu0 }
 0x27b   : > { %v1060_v11 = vmul.f32 %v3521_v9, %v863_v41  ;;  %v1276_v12 = vrot.slane %v3521_v9, 7  ;;  %vm839_vm9 = vcmp.gt.f32.partialorder %v3523_v10, 0.5  ;;  %v1083_v19 = vrot.slane %v1061_v8, 1  ;;  %v980_v41 = vld [vmem:[%s4818_s5 + $0x88] sm:$0xff]  ;;  %v1667_v10 = vld [vmem:[%s4819_s6 + $0x1f0] sm:$0xff] }
 0x27c   : > { %v3533_v42 = vsel %vm839_vm9, 1.0, %v3037_v57  ;;  %v3535_v15 = vpop.f32.mrf.mxu0  ;;  %v1070_v20 = vrot.slane %v1061_v8, 7 }
 0x27d   : > { %v1069_v18 = vrot.slane %v1060_v11, 7  ;;  %1158 = vmatprep.mubr.f32.mxu0 %v1060_v11  ;;  %v3547_v21 = vmul.f32 %v3533_v42, %v866_v13  ;;  %vm838_vm11 = vcmp.gt.f32.partialorder %v3535_v15, 0.5  ;;  %v1082_v22 = vrot.slane %v1060_v11, 1  ;;  %v1043_v11 = vld [vmem:[%s4818_s5 + $0x280] sm:$0xff]  ;;  %v1620_v15 = vld [vmem:[%s4819_s6 + $0x78] sm:$0xff] }
 0x27e   : > { %v3556_v44 = vsel %vm1068_vm7, %v1276_v12, %v1277_v14  ;;  %v1281_v24 = vrot.slane %v3533_v42, 7  ;;  %v3562_v25 = vsel %vm838_vm11, 1.0, %v3037_v57  ;;  %v979_v13 = vld [vmem:[%s4818_s5 + $0x80] sm:$0xff] }
 0x27f   : > { %2613 = vmatmul.mubr.msk.f32.vlgmr.msra.gmra.mxu0 %vm3538_vm10, %v1069_v18  ;;  %v1071_v28 = vsel %vm1068_vm7, %v1069_v18, %v1070_v20  ;;  %v1062_v29 = vmul.f32 %v3562_v25, %v865_v17  ;;  %v1279_v30 = vrot.slane %v3562_v25, 7  ;;  %v1084_v31 = vsel %vm1081_vm12, %v1082_v22, %v1083_v19  ;;  %v978_v17 = vld [vmem:[%s4818_s5 + $0x78] sm:$0xff]  ;;  %v975_v22 = vld [vmem:[%s4818_s5 + $0x60] sm:$0xff] }
 0x280   : > { %1390 = vmatpush1.msra.mxu0 %v1057_v43  ;;  %1164 = vmatprep.mubr.f32.mxu0 %v1061_v8  ;;  %v1087_v38 = vrot.slane %v3547_v21, 1  ;;  %v1074_v40 = vrot.slane %v3547_v21, 7  ;;  %v1044_v8 = vld [vmem:[%s4818_s5 + $0x288] sm:$0xff]  ;;  %v3038_v18 = vmov 1.0   ;;  %v1041_v43 = vld [vmem:[%s4818_s5 + $0x270] sm:$0xff] }
 0x281   : > { %1248 = vmatmul.mubr.f32.vlgmr.msra.gmra.mxu1 %v1084_v31  ;;  %1391 = vmatprep.subr.mxu0 %v1056_v23  ;;  %v1085_v36 = vrot.slane %v1062_v29, 1  ;;  %v1072_v37 = vrot.slane %v1062_v29, 7  ;;  %v3594_v45 = vsel %vm1068_vm7, %v1277_v14, %v1279_v30  ;;  %v3597_v46 = vsel %vm1068_vm7, %v1279_v30, %v1281_v24  ;;  %v1042_v14 = vld [vmem:[%s4818_s5 + $0x278] sm:$0xff]  ;;  %v1035_v30 = vld [vmem:[%s4818_s5 + $0x240] sm:$0xff] }
 0x282   : > { %1301 = vmatpush1.msra.mxu1 %v993_v26  ;;  %1392 = vmatpush1.msra.mxu0 %v1055_v27  ;;  %v1038_v23 = vld [vmem:[%s4818_s5 + $0x258] sm:$0xff]  ;;  %v1037_v26 = vld [vmem:[%s4818_s5 + $0x250] sm:$0xff]  ;;  %v971_v31 = vld [vmem:[%s4818_s5 + $0x40] sm:$0xff] }
 0x283   : > { %1302 = vmatprep.subr.mxu1 %v992_v32  ;;  %1393 = vmatprep.subr.mxu0 %v1054_v33  ;;  %v1086_v47 = vsel %vm1081_vm12, %v1083_v19, %v1085_v36  ;;  %v1073_v49 = vsel %vm1068_vm7, %v1070_v20, %v1072_v37  ;;  %v1088_v50 = vsel %vm1081_vm12, %v1085_v36, %v1087_v38  ;;  %v977_v19 = vld [vmem:[%s4818_s5 + $0x70] sm:$0xff]  ;;  %v1040_v20 = vld [vmem:[%s4818_s5 + $0x268] sm:$0xff]  ;;  %v974_v24 = vld [vmem:[%s4818_s5 + $0x58] sm:$0xff] }
 0x284   : > { %1303 = vmatpush1.msra.mxu1 %v991_v34  ;;  %1165 = vmatmul.mubr.f32.gmra.mxu0 %v1071_v28  ;;  %v1075_v53 = vsel %vm1068_vm7, %v1072_v37, %v1074_v40  ;;  %v973_v27 = vld [vmem:[%s4818_s5 + $0x50] sm:$0xff]  ;;  %v1036_v28 = vld [vmem:[%s4818_s5 + $0x248] sm:$0xff]  ;;  %v1034_v32 = vld [vmem:[%s4818_s5 + $0x238] sm:$0xff] }
 0x285   : > { %1253 = vmatprep.mubr.f32.mxu1 %v3037_v57  ;;  %1304 = vmatprep.subr.mxu1 %v990_v35  ;;  %v970_v33 = vld [vmem:[%s4818_s5 + $0x38] sm:$0xff]  ;;  %v1033_v34 = vld [vmem:[%s4818_s5 + $0x230] sm:$0xff]  ;;  %v1032_v36 = vld [vmem:[%s4818_s5 + $0x228] sm:$0xff] }
 0x286   : > { %1394 = vmatpush1.msra.mxu0 %v1053_v39  ;;  %1170 = vmatprep.mubr.f32.mxu0 %v1062_v29  ;;  %v972_v29 = vld [vmem:[%s4818_s5 + $0x48] sm:$0xff]  ;;  %v969_v35 = vld [vmem:[%s4818_s5 + $0x30] sm:$0xff]  ;;  %v967_v39 = vld [vmem:[%s4818_s5 + $0x20] sm:$0xff] }
 0x287   : > { %1254 = vmatmul.mubr.f32.gmra.mxu1 %v1086_v47  ;;  %1395 = vmatprep.subr.mxu0 %v1052_v48  ;;  %v968_v37 = vld [vmem:[%s4818_s5 + $0x28] sm:$0xff]  ;;  %v1030_v40 = vld [vmem:[%s4818_s5 + $0x218] sm:$0xff]  ;;  %v1029_v48 = vld [vmem:[%s4818_s5 + $0x210] sm:$0xff] }
 0x288   : > { %1305 = vmatpush1.msra.mxu1 %v989_v51  ;;  %1396 = vmatpush1.msra.mxu0 %v1051_v52  ;;  %v966_v47 = vld [vmem:[%s4818_s5 + $0x18] sm:$0xff]  ;;  %v1028_v51 = vld [vmem:[%s4818_s5 + $0x208] sm:$0xff] }
 0x289   : > { %1306 = vmatprep.subr.mxu1 %v988_v54  ;;  %1397 = vmatprep.subr.mxu0 %v1050_v55  ;;  %v964_v52 = vld [vmem:[%s4818_s5 + $0x8] sm:$0xff]  ;;  %v1289_v54 = vrot.slane %v3509_v5, 1  ;;  %v963_v55 = vld [vmem:[%s4818_s5] sm:$0xff]  ;;  %v1025_v5 = vld [vmem:[%s4818_s5 + $0x1f0] sm:$0xff] }
 0x28a   : > { %1307 = vmatpush1.msra.mxu1 %v987_v56  ;;  %1171 = vmatmul.mubr.f32.gmra.mxu0 %v1073_v49  ;;  %v965_v49 = vld [vmem:[%s4818_s5 + $0x10] sm:$0xff]  ;;  %v1026_v56 = vld [vmem:[%s4818_s5 + $0x1f8] sm:$0xff] }
 0x28b   : > { %1259 = vmatprep.mubr.f32.mxu1 %v3037_v57  ;;  %1308 = vmatprep.subr.mxu1 %v986_v58  ;;  %v1291_v58 = vrot.slane %v3562_v25, 1  ;;  %v1023_v25 = vld [vmem:[%s4818_s5 + $0x1e0] sm:$0xff] }
 0x28c   : > { %1398 = vmatpush1.msra.mxu0 %v1049_v59  ;;  %1176 = vmatprep.mubr.f32.mxu0 %v3547_v21  ;;  %v976_v21 = vld [vmem:[%s4818_s5 + $0x68] sm:$0xff] }
 0x28d   : > { %1260 = vmatmul.mubr.f32.gmra.mxu1 %v1088_v50  ;;  %1399 = vmatprep.subr.mxu0 %v1048_v60  ;;  %v1288_v50 = vrot.slane %v3521_v9, 1  ;;  %v1024_v60 = vld [vmem:[%s4818_s5 + $0x1e8] sm:$0xff]  ;;  %v1668_v9 = vld [vmem:[%s4819_s6 + $0x1f8] sm:$0xff] }
 0x28e   : > { %1309 = vmatpush1.msra.mxu1 %v985_v61  ;;  %1400 = vmatpush1.msra.mxu0 %v1047_v62  ;;  %v1293_v61 = vrot.slane %v3533_v42, 1  ;;  %v1022_v62 = vld [vmem:[%s4818_s5 + $0x1d8] sm:$0xff]  ;;  %v1020_v42 = vld [vmem:[%s4818_s5 + $0x1c8] sm:$0xff] }
 0x28f   : > { %1310 = vmatprep.subr.mxu1 %v984_v63  ;;  %1401 = vmatprep.subr.mxu0 %v1046_v0  ;;  %v1290_v59 = vsel %vm1081_vm12, %v1288_v50, %v1289_v54  ;;  %v1292_v63 = vsel %vm1081_vm12, %v1289_v54, %v1291_v58  ;;  %v1021_v0 = vld [vmem:[%s4818_s5 + $0x1d0] sm:$0xff]  ;;  %v1616_v50 = vld [vmem:[%s4819_s6 + $0x58] sm:$0xff] }
 0x290   : > { %1311 = vmatpush1.msra.mxu1 %v983_v1  ;;  %1177 = vmatmul.mubr.f32.gmra.mxu0 %v1075_v53  ;;  %v1027_v53 = vld [vmem:[%s4818_s5 + $0x200] sm:$0xff]  ;;  %v1615_v54 = vld [vmem:[%s4819_s6 + $0x50] sm:$0xff] }
 0x291   : > { %1265 = vmatprep.mubr.f32.mxu1 %v3037_v57  ;;  %1312 = vmatprep.subr.mxu1 %v982_v3  ;;  %v1019_v1 = vld [vmem:[%s4818_s5 + $0x1c0] sm:$0xff]  ;;  %v1294_v3 = vsel %vm1081_vm12, %v1291_v58, %v1293_v61 }
 0x292   : > { %1402 = vmatpush1.msra.mxu0 %v1045_v4  ;;  %2614 = vmatmul.mubr.msk.f32.gmra.mxu1 %vm1081_vm12, %v1087_v38  ;;  %v1031_v38 = vld [vmem:[%s4818_s5 + $0x220] sm:$0xff]  ;;  %v1018_v4 = vld [vmem:[%s4818_s5 + $0x1b8] sm:$0xff] }
 0x293   : > { %1313 = vmatpush1.msra.mxu1 %v981_v7  ;;  %1403 = vmatprep.subr.mxu0 %v1044_v8  ;;  %v1017_v7 = vld [vmem:[%s4818_s5 + $0x1b0] sm:$0xff]  ;;  %v1016_v8 = vld [vmem:[%s4818_s5 + $0x1a8] sm:$0xff]  ;;  %v1661_v58 = vld [vmem:[%s4819_s6 + $0x1c0] sm:$0xff] }
 0x294   : > { %1314 = vmatprep.subr.mxu1 %v980_v41  ;;  %2615 = vmatprep.mubr.msk.f32.mxu1 %vm836_vm6, %v3038_v18  ;;  %v1015_v41 = vld [vmem:[%s4818_s5 + $0x1a0] sm:$0xff] }
 0x295   : > { %1404 = vmatpush1.msra.mxu0 %v1043_v11  ;;  %1315 = vmatpush1.msra.mxu1 %v979_v13  ;;  %v1014_v11 = vld [vmem:[%s4818_s5 + $0x198] sm:$0xff]  ;;  %v1013_v13 = vld [vmem:[%s4818_s5 + $0x190] sm:$0xff] }
 0x296   : > { %1405 = vmatprep.subr.mxu0 %v1042_v14  ;;  %1316 = vmatprep.subr.mxu1 %v978_v17  ;;  %v1012_v14 = vld [vmem:[%s4818_s5 + $0x188] sm:$0xff]  ;;  %v1010_v17 = vld [vmem:[%s4818_s5 + $0x178] sm:$0xff] }
 0x297   : > { %1406 = vmatpush1.msra.mxu0 %v1041_v43  ;;  %1317 = vmatpush1.msra.mxu1 %v977_v19  ;;  %v1009_v43 = vld [vmem:[%s4818_s5 + $0x170] sm:$0xff]  ;;  %v1008_v19 = vld [vmem:[%s4818_s5 + $0x168] sm:$0xff] }
 0x298   : > { %1407 = vmatprep.subr.mxu0 %v1040_v20  ;;  %1318 = vmatprep.subr.mxu1 %v976_v21  ;;  %v1007_v20 = vld [vmem:[%s4818_s5 + $0x160] sm:$0xff]  ;;  %v1006_v21 = vld [vmem:[%s4818_s5 + $0x158] sm:$0xff] }
 0x299   : > { %1408 = vmatpush1.msra.mxu0 %v1039_v6  ;;  %1319 = vmatpush1.msra.mxu1 %v975_v22  ;;  %v1005_v6 = vld [vmem:[%s4818_s5 + $0x150] sm:$0xff]  ;;  %v1004_v22 = vld [vmem:[%s4818_s5 + $0x148] sm:$0xff] }
 0x29a   : > { %1409 = vmatprep.subr.mxu0 %v1038_v23  ;;  %1320 = vmatprep.subr.mxu1 %v974_v24  ;;  %v1003_v23 = vld [vmem:[%s4818_s5 + $0x140] sm:$0xff]  ;;  %v1002_v24 = vld [vmem:[%s4818_s5 + $0x138] sm:$0xff] }
 0x29b   : > { %1410 = vmatpush1.msra.mxu0 %v1037_v26  ;;  %1321 = vmatpush1.msra.mxu1 %v973_v27  ;;  %v1001_v26 = vld [vmem:[%s4818_s5 + $0x130] sm:$0xff]  ;;  %v1000_v27 = vld [vmem:[%s4818_s5 + $0x128] sm:$0xff] }
 0x29c   : > { %1411 = vmatprep.subr.mxu0 %v1036_v28  ;;  %1322 = vmatprep.subr.mxu1 %v972_v29  ;;  %v999_v28 = vld [vmem:[%s4818_s5 + $0x120] sm:$0xff]  ;;  %v998_v29 = vld [vmem:[%s4818_s5 + $0x118] sm:$0xff] }
 0x29d   : > { %1412 = vmatpush1.msra.mxu0 %v1035_v30  ;;  %1323 = vmatpush1.msra.mxu1 %v971_v31  ;;  %v997_v30 = vld [vmem:[%s4818_s5 + $0x110] sm:$0xff]  ;;  %v996_v31 = vld [vmem:[%s4818_s5 + $0x108] sm:$0xff] }
 0x29e   : > { %1413 = vmatprep.subr.mxu0 %v1034_v32  ;;  %1324 = vmatprep.subr.mxu1 %v970_v33  ;;  %v995_v32 = vld [vmem:[%s4818_s5 + $0x100] sm:$0xff]  ;;  %v1650_v33 = vld [vmem:[%s4819_s6 + $0x168] sm:$0xff] }
 0x29f   : > { %1414 = vmatpush1.msra.mxu0 %v1033_v34  ;;  %1325 = vmatpush1.msra.mxu1 %v969_v35  ;;  %v1634_v34 = vld [vmem:[%s4819_s6 + $0xe8] sm:$0xff]  ;;  %v1665_v35 = vld [vmem:[%s4819_s6 + $0x1e0] sm:$0xff] }
 0x2a0   : > { %1415 = vmatprep.subr.mxu0 %v1032_v36  ;;  %1326 = vmatprep.subr.mxu1 %v968_v37  ;;  %v1618_v36 = vld [vmem:[%s4819_s6 + $0x68] sm:$0xff]  ;;  %v1649_v37 = vld [vmem:[%s4819_s6 + $0x160] sm:$0xff] }
 0x2a1   : > { %1416 = vmatpush1.msra.mxu0 %v1031_v38  ;;  %1327 = vmatpush1.msra.mxu1 %v967_v39  ;;  %v1633_v38 = vld [vmem:[%s4819_s6 + $0xe0] sm:$0xff]  ;;  %v1664_v39 = vld [vmem:[%s4819_s6 + $0x1d8] sm:$0xff] }
 0x2a2   : > { %1417 = vmatprep.subr.mxu0 %v1030_v40  ;;  %1328 = vmatprep.subr.mxu1 %v966_v47  ;;  %v1617_v40 = vld [vmem:[%s4819_s6 + $0x60] sm:$0xff]  ;;  %v1648_v47 = vld [vmem:[%s4819_s6 + $0x158] sm:$0xff] }
 0x2a3   : > { %1418 = vmatpush1.msra.mxu0 %v1029_v48  ;;  %1329 = vmatpush1.msra.mxu1 %v965_v49  ;;  %v1632_v48 = vld [vmem:[%s4819_s6 + $0xd8] sm:$0xff]  ;;  %v1663_v49 = vld [vmem:[%s4819_s6 + $0x1d0] sm:$0xff] }
 0x2a4   : > { %1419 = vmatprep.subr.mxu0 %v1028_v51  ;;  %1330 = vmatprep.subr.mxu1 %v964_v52  ;;  %v1647_v51 = vld [vmem:[%s4819_s6 + $0x150] sm:$0xff] }
 0x2a5   : > { %1420 = vmatpush1.msra.mxu0 %v1027_v53  ;;  %1453 = vmatprep.mubr.f32.mxu0 %v3037_v57  ;;  %v1631_v52 = vld [vmem:[%s4819_s6 + $0xd0] sm:$0xff]  ;;  %v1662_v53 = vld [vmem:[%s4819_s6 + $0x1c8] sm:$0xff] }
 0x2a6   : > { %1331 = vmatpush1.msra.mxu1 %v963_v55  ;;  %1454 = vmatmul.mubr.f32.vlgmr.msra.gmra.mxu0 %v1290_v59  ;;  %v1646_v55 = vld [vmem:[%s4819_s6 + $0x148] sm:$0xff] }
 0x2a7   : > { %1332 = vmatprep.subr.mxu1 %v1026_v56  ;;  %1459 = vmatprep.mubr.f32.mxu0 %v3037_v57  ;;  %v1630_v56 = vld [vmem:[%s4819_s6 + $0xc8] sm:$0xff] }
 0x2a8   : > { %1333 = vmatpush2.msra.mxu1 %v1025_v5  ;;  %v1614_v59 = vld [vmem:[%s4819_s6 + $0x48] sm:$0xff]  ;;  %v1645_v5 = vld [vmem:[%s4819_s6 + $0x140] sm:$0xff] }
 0x2a9   : > { %1334 = vmatprep.subr.mxu1 %v1024_v60  ;;  %v1629_v60 = vld [vmem:[%s4819_s6 + $0xc0] sm:$0xff] }
 0x2aa   : > { %1335 = vmatpush2.msra.mxu1 %v1023_v25  ;;  %1460 = vmatmul.mubr.f32.gmra.mxu0 %v1292_v63  ;;  %v1613_v25 = vld [vmem:[%s4819_s6 + $0x40] sm:$0xff]  ;;  %v1628_v63 = vld [vmem:[%s4819_s6 + $0xb8] sm:$0xff] }
 0x2ab   : > { %1336 = vmatprep.subr.mxu1 %v1022_v62  ;;  %1465 = vmatprep.mubr.f32.mxu0 %v3037_v57  ;;  %v1644_v62 = vld [vmem:[%s4819_s6 + $0x138] sm:$0xff] }
 0x2ac   : > { %1337 = vmatpush2.msra.mxu1 %v1021_v0  ;;  %v1659_v0 = vld [vmem:[%s4819_s6 + $0x1b0] sm:$0xff] }
 0x2ad   : > { %1338 = vmatprep.subr.mxu1 %v1020_v42  ;;  %v1612_v42 = vld [vmem:[%s4819_s6 + $0x38] sm:$0xff] }
 0x2ae   : > { %1339 = vmatpush2.msra.mxu1 %v1019_v1  ;;  %1466 = vmatmul.mubr.f32.gmra.mxu0 %v1294_v3  ;;  %v1643_v1 = vld [vmem:[%s4819_s6 + $0x130] sm:$0xff] }
 0x2af   : > { %1340 = vmatprep.subr.mxu1 %v1018_v4  ;;  %1471 = vmatprep.mubr.f32.mxu0 %v3037_v57  ;;  %v1011_v57 = vld [vmem:[%s4818_s5 + $0x180] sm:$0xff]  ;;  %v1627_v3 = vld [vmem:[%s4819_s6 + $0xb0] sm:$0xff]  ;;  %v1658_v4 = vld [vmem:[%s4819_s6 + $0x1a8] sm:$0xff] }
 0x2b0   : > { %1341 = vmatpush2.msra.mxu1 %v1017_v7  ;;  %v1611_v7 = vld [vmem:[%s4819_s6 + $0x30] sm:$0xff] }
 0x2b1   : > { %1342 = vmatprep.subr.mxu1 %v1016_v8  ;;  %v1642_v8 = vld [vmem:[%s4819_s6 + $0x128] sm:$0xff] }
 0x2b2   : > { %1343 = vmatpush2.msra.mxu1 %v1015_v41  ;;  %2621 = vmatmul.mubr.msk.f32.gmra.mxu0 %vm1081_vm12, %v1293_v61  ;;  %v1660_v61 = vld [vmem:[%s4819_s6 + $0x1b8] sm:$0xff]  ;;  %v1626_v41 = vld [vmem:[%s4819_s6 + $0xa8] sm:$0xff] }
 0x2b3   : > { %1344 = vmatprep.subr.mxu1 %v1014_v11  ;;  %v1657_v11 = vld [vmem:[%s4819_s6 + $0x1a0] sm:$0xff] }
 0x2b4   : > { %1345 = vmatpush2.msra.mxu1 %v1013_v13  ;;  %v1610_v13 = vld [vmem:[%s4819_s6 + $0x28] sm:$0xff] }
 0x2b5   : > { %1346 = vmatprep.subr.mxu1 %v1012_v14  ;;  %v1641_v14 = vld [vmem:[%s4819_s6 + $0x120] sm:$0xff] }
 0x2b6   : > { %1347 = vmatpush2.msra.mxu1 %v1011_v57  ;;  %v1625_v57 = vld [vmem:[%s4819_s6 + $0xa0] sm:$0xff] }
 0x2b7   : > { %1348 = vmatprep.subr.mxu1 %v1010_v17  ;;  %v1656_v17 = vld [vmem:[%s4819_s6 + $0x198] sm:$0xff] }
 0x2b8   : > { %1349 = vmatpush2.msra.mxu1 %v1009_v43  ;;  %v1609_v43 = vld [vmem:[%s4819_s6 + $0x20] sm:$0xff] }
 0x2b9   : > { %1350 = vmatprep.subr.mxu1 %v1008_v19  ;;  %v1640_v19 = vld [vmem:[%s4819_s6 + $0x118] sm:$0xff] }
 0x2ba   : > { %1351 = vmatpush2.msra.mxu1 %v1007_v20  ;;  %v1624_v20 = vld [vmem:[%s4819_s6 + $0x98] sm:$0xff] }
 0x2bb   : > { %1352 = vmatprep.subr.mxu1 %v1006_v21  ;;  %v1655_v21 = vld [vmem:[%s4819_s6 + $0x190] sm:$0xff] }
 0x2bc   : > { %1353 = vmatpush2.msra.mxu1 %v1005_v6  ;;  %v1608_v6 = vld [vmem:[%s4819_s6 + $0x18] sm:$0xff] }
 0x2bd   : > { %1354 = vmatprep.subr.mxu1 %v1004_v22  ;;  %v1639_v22 = vld [vmem:[%s4819_s6 + $0x110] sm:$0xff] }
 0x2be   : > { %1355 = vmatpush2.msra.mxu1 %v1003_v23  ;;  %v1623_v23 = vld [vmem:[%s4819_s6 + $0x90] sm:$0xff] }
 0x2bf   : > { %1356 = vmatprep.subr.mxu1 %v1002_v24  ;;  %v1654_v24 = vld [vmem:[%s4819_s6 + $0x188] sm:$0xff] }
 0x2c0   : > { %1357 = vmatpush2.msra.mxu1 %v1001_v26  ;;  %v1607_v26 = vld [vmem:[%s4819_s6 + $0x10] sm:$0xff] }
 0x2c1   : > { %1358 = vmatprep.subr.mxu1 %v1000_v27  ;;  %v1638_v27 = vld [vmem:[%s4819_s6 + $0x108] sm:$0xff] }
 0x2c2   : > { %1359 = vmatpush2.msra.mxu1 %v999_v28  ;;  %v1622_v28 = vld [vmem:[%s4819_s6 + $0x88] sm:$0xff] }
 0x2c3   : > { %1360 = vmatprep.subr.mxu1 %v998_v29  ;;  %v1653_v29 = vld [vmem:[%s4819_s6 + $0x180] sm:$0xff] }
 0x2c4   : > { %1361 = vmatpush2.msra.mxu1 %v997_v30  ;;  %v1606_v30 = vld [vmem:[%s4819_s6 + $0x8] sm:$0xff] }
 0x2c5   : > { %1362 = vmatprep.subr.mxu1 %v996_v31  ;;  %v1637_v31 = vld [vmem:[%s4819_s6 + $0x100] sm:$0xff] }
 0x2c6   : > { %1363 = vmatpush2.msra.mxu1 %v995_v32  ;;  %v1621_v32 = vld [vmem:[%s4819_s6 + $0x80] sm:$0xff] }
 0x2c7   : > { %2617 = vmatmul.mubr.msk.f32.vlgmr.msra.gmra.mxu1 %vm3538_vm10, %v1276_v12  ;;  %2717 = vmatprep.subr.mxu1 %v1668_v9  ;;  %v1636_v12 = vld [vmem:[%s4819_s6 + $0xf8] sm:$0xff] }
 0x2c8   : > { %2618 = vmatprep.mubr.msk.f32.mxu1 %vm837_vm4, %v3038_v18  ;;  %2718 = vmatpush3.msra.mxu1 %v1652_v2  ;;  %v1732_v9 = vld [vmem:[%s4820_s7 + $0xf8] sm:$0xff]  ;;  %v1605_v2 = vld [vmem:[%s4819_s6] sm:$0xff] }
 0x2c9   : > { %2673 = vmatprep.subr.mxu0 %v1636_v12  ;;  %2719 = vmatprep.subr.mxu1 %v1667_v10  ;;  %v1700_v12 = vld [vmem:[%s4819_s6 + $0x2f8] sm:$0xff] }
 0x2ca   : > { %2674 = vmatpush3.msra.mxu0 %v1620_v15 }
 0x2cb   : > { %1371 = vmatmul.mubr.f32.gmra.mxu1 %v3556_v44  ;;  %v1651_v44 = vld [vmem:[%s4819_s6 + $0x170] sm:$0xff] }
 0x2cc   : > { %2619 = vmatprep.mubr.msk.f32.mxu1 %vm838_vm11, %v3038_v18  ;;  %2720 = vmatpush3.msra.mxu1 %v1651_v44 }
 0x2cf   : > { %1377 = vmatmul.mubr.f32.gmra.mxu1 %v3594_v45  ;;  %v1635_v45 = vld [vmem:[%s4819_s6 + $0xf0] sm:$0xff] }
 0x2d0   : > { %2620 = vmatprep.mubr.msk.f32.mxu1 %vm839_vm9, %v3038_v18  ;;  %2675 = vmatprep.subr.mxu0 %v1635_v45  ;;  %v1619_v18 = vld [vmem:[%s4819_s6 + $0x70] sm:$0xff] }
 0x2d1   : > { %2676 = vmatpush3.msra.mxu0 %v1619_v18 }
 0x2d2   : > { %2677 = vmatprep.subr.mxu0 %v1634_v34 }
 0x2d3   : > { %1383 = vmatmul.mubr.f32.gmra.mxu1 %v3597_v46  ;;  %v1666_v46 = vld [vmem:[%s4819_s6 + $0x1e8] sm:$0xff]  ;;  %2678 = vmatpush3.msra.mxu0 %v1618_v36 }
 0x2d4   : > { %2721 = vmatprep.subr.mxu1 %v1666_v46  ;;  %2679 = vmatprep.subr.mxu0 %v1633_v38 }
 0x2d5   : > { %2722 = vmatpush3.msra.mxu1 %v1650_v33  ;;  %2680 = vmatpush3.msra.mxu0 %v1617_v40 }
 0x2d6   : > { %2723 = vmatprep.subr.mxu1 %v1665_v35  ;;  %2681 = vmatprep.subr.mxu0 %v1632_v48 }
 0x2d7   : > { %2724 = vmatpush3.msra.mxu1 %v1649_v37  ;;  %2682 = vmatpush3.msra.mxu0 %v1616_v50 }
 0x2d8   : > { %2725 = vmatprep.subr.mxu1 %v1664_v39  ;;  %2683 = vmatprep.subr.mxu0 %v1631_v52 }
 0x2d9   : > { %2726 = vmatpush3.msra.mxu1 %v1648_v47  ;;  %2684 = vmatpush3.msra.mxu0 %v1615_v54 }
 0x2da   : > { %2727 = vmatprep.subr.mxu1 %v1663_v49  ;;  %2685 = vmatprep.subr.mxu0 %v1630_v56 }
 0x2db   : > { %2728 = vmatpush3.msra.mxu1 %v1647_v51  ;;  %2686 = vmatpush3.msra.mxu0 %v1614_v59 }
 0x2dc   : > { %2729 = vmatprep.subr.mxu1 %v1662_v53  ;;  %2687 = vmatprep.subr.mxu0 %v1629_v60 }
 0x2dd   : > { %2730 = vmatpush3.msra.mxu1 %v1646_v55  ;;  %2688 = vmatpush3.msra.mxu0 %v1613_v25  ;;  %v1527_v55 = vlaneseq }
 0x2de   : > { %2731 = vmatprep.subr.mxu1 %v1661_v58  ;;  %2689 = vmatprep.subr.mxu0 %v1628_v63 }
 0x2df   : > { %2732 = vmatpush3.msra.mxu1 %v1645_v5  ;;  %2690 = vmatpush3.msra.mxu0 %v1612_v42  ;;  %v1528_v25 = vshrl.u32 %v1527_v55, 7 }
 0x2e0   : > { %2733 = vmatprep.subr.mxu1 %v1660_v61  ;;  %2691 = vmatprep.subr.mxu0 %v1627_v3 }
 0x2e1   : > { %2734 = vmatpush3.msra.mxu1 %v1644_v62  ;;  %2692 = vmatpush3.msra.mxu0 %v1611_v7 }
 0x2e2   : > { %2735 = vmatprep.subr.mxu1 %v1659_v0  ;;  %2693 = vmatprep.subr.mxu0 %v1626_v41 }
 0x2e3   : > { %2736 = vmatpush3.msra.mxu1 %v1643_v1  ;;  %2694 = vmatpush3.msra.mxu0 %v1610_v13  ;;  %v1059_v13 = vld [vmem:[%s4822_s9] sm:$0x3] }
 0x2e4   : > { %2737 = vmatprep.subr.mxu1 %v1658_v4  ;;  %2695 = vmatprep.subr.mxu0 %v1625_v57 }
 0x2e5   : > { %2738 = vmatpush3.msra.mxu1 %v1642_v8  ;;  %2696 = vmatpush3.msra.mxu0 %v1609_v43  ;;  %v1529_v8 = vsub.s32 0, %v1528_v25 }
 0x2e6   : > { %2739 = vmatprep.subr.mxu1 %v1657_v11  ;;  %2697 = vmatprep.subr.mxu0 %v1624_v20 }
 0x2e7   : > { %2740 = vmatpush3.msra.mxu1 %v1641_v14  ;;  %2698 = vmatpush3.msra.mxu0 %v1608_v6  ;;  %v1533_v14 = vsub.s32 1, %v1528_v25  ;;  %v4122_v20 = vrot.slane %v1059_v13, %v1529_v8 }
 0x2e8   : > { %2741 = vmatprep.subr.mxu1 %v1656_v17  ;;  %2699 = vmatprep.subr.mxu0 %v1623_v23 }
 0x2e9   : > { %2742 = vmatpush3.msra.mxu1 %v1640_v19  ;;  %2700 = vmatpush3.msra.mxu0 %v1607_v26  ;;  %v4125_v23 = vrot.slane %v1059_v13, %v1533_v14 }
 0x2ea   : > { %2743 = vmatprep.subr.mxu1 %v1655_v21  ;;  %2701 = vmatprep.subr.mxu0 %v1622_v28  ;;  %v1569_v28 = vld [vmem:[%s4823_s10] sm:$0x3] }
 0x2eb   : > { %2744 = vmatpush3.msra.mxu1 %v1639_v22  ;;  %2702 = vmatpush3.msra.mxu0 %v1606_v30 }
 0x2ec   : > { %2745 = vmatprep.subr.mxu1 %v1654_v24  ;;  %2703 = vmatprep.subr.mxu0 %v1621_v32 }
 0x2ed   : > { %2746 = vmatpush3.msra.mxu1 %v1638_v27  ;;  %2704 = vmatpush3.msra.mxu0 %v1605_v2 }
 0x2ee   : > { %2747 = vmatprep.subr.mxu1 %v1653_v29  ;;  %2761 = vmatprep.subr.mxu0 %v1700_v12 }
 0x2ef   : > { %2748 = vmatpush3.msra.mxu1 %v1637_v31 }
 0x2f0   : > { %2805 = vmatprep.subr.mxu1 %v1732_v9 }
 0x33f   : > { %v1160_v10 = vpop.f32.mrf.mxu0 }
 0x341   : > { %v1162_v15 = vpop.f32.mrf.mxu0  ;;  %v1249_v45 = vpop.f32.mrf.mxu1 }
 0x342   : > { %v1250_v29 = vadd.f32 %v1249_v45, %v1160_v10 }
 0x343   : > { %v1251_v18 = vpop.f32.mrf.mxu1 }
 0x344   : > { %v1166_v44 = vpop.f32.mrf.mxu0  ;;  %v1252_v30 = vadd.f32 %v1251_v18, %v1162_v15  ;;  %v1537_v45 = vsub.f32 %v1250_v29, %v4122_v20 }
 0x346   : > { %v4092_v46 = vpop.f32.mrf.mxu0  ;;  %v1538_v18 = vsub.f32 %v1252_v30, %v4125_v23 }
 0x347   : > { %v1255_v34 = vpop.f32.mrf.mxu1 }
 0x348   : > { %v1256_v31 = vadd.f32 %v1255_v34, %v1166_v44 }
 0x349   : > { %v1257_v36 = vpop.f32.mrf.mxu1 }
 0x34a   : > { %v4094_v33 = vpop.f32.mrf.mxu0  ;;  %v1258_v12 = vadd.f32 %v1257_v36, %v4092_v46  ;;  %v1539_v46 = vsub.f32 %v1256_v31, %v4122_v20 }
 0x34c   : > { %v4096_v35 = vpop.f32.mrf.mxu0 }
 0x34d   : > { %v1261_v38 = vpop.f32.mrf.mxu1 }
 0x34f   : > { %v1263_v47 = vpop.f32.mrf.mxu1 }
 0x350   : > { %v4098_v37 = vpop.f32.mrf.mxu0 }
 0x352   : > { %v4100_v39 = vpop.f32.mrf.mxu0  ;;  %v4102_v49 = vpop.f32.mrf.mxu1 }
 0x354   : > { %v4104_v51 = vpop.f32.mrf.mxu1 }
 0x366   : > { %v1455_v40 = vpop.f32.mrf.mxu0 }
 0x368   : > { %v1457_v48 = vpop.f32.mrf.mxu0 }
 0x36a   : > { %v1461_v50 = vpop.f32.mrf.mxu0 }
 0x36c   : > { %v1463_v52 = vpop.f32.mrf.mxu0 }
 0x36e   : > { %v1467_v56 = vpop.f32.mrf.mxu0 }
 0x370   : > { %v1469_v62 = vpop.f32.mrf.mxu0 }
 0x372   : > { %v1473_v41 = vpop.f32.mrf.mxu0 }
 0x374   : > { %v1475_v21 = vpop.f32.mrf.mxu0 }
 0x387   : > { %v1366_v53 = vpop.f32.mrf.mxu1 }
 0x388   : > { %v1456_v54 = vadd.f32 %v1455_v40, %v1366_v53  ;;  %v1262_v40 = vadd.f32 %v1261_v38, %v4094_v33 }
 0x389   : > { %v1368_v58 = vpop.f32.mrf.mxu1 }
 0x38a   : > { %v1478_v59 = vadd.f32 1e-08, %v1456_v54  ;;  %v1458_v5 = vadd.f32 %v1457_v48, %v1368_v58  ;;  %v1502_v24 = vmax.f32 %v1456_v54, 0.0  ;;  %v4136_v48 = vrot.slane %v1569_v28, %v1529_v8 }
 0x38b   : > { %v1372_v60 = vpop.f32.mrf.mxu1  ;;  %v1541_v53 = vsub.f32 %v1262_v40, %v4122_v20  ;;  %v1268_v54 = vadd.f32 %v4102_v49, %v4098_v37 }
 0x38c   : > { %3005 = vrcp.f32 %v1478_v59  ;;  %v1479_v61 = vadd.f32 1e-08, %v1458_v5  ;;  %v4106_v63 = vadd.f32 %v1461_v50, %v1372_v60  ;;  %v1503_v32 = vmax.f32 %v1458_v5, 0.0 }
 0x38d   : > { %v1374_v0 = vpop.f32.mrf.mxu1  ;;  %v4138_v50 = vrot.slane %v1569_v28, %v1533_v14  ;;  %v4143_v15 = vmin.f32 %v1502_v24, 1.0  ;;  %v4162_v59 = vadd.f32 %v4104_v51, %v4100_v39  ;;  %v1543_v39 = vsub.f32 %v1268_v54, %v4122_v20 }
 0x38e   : > { %3007 = vrcp.f32 %v1479_v61  ;;  %v4108_v42 = vadd.f32 %v1463_v52, %v1374_v0  ;;  %v1480_v1 = vadd.f32 1e-08, %v4106_v63  ;;  %v4141_v52 = vadd.f32 %v1263_v47, %v4096_v35 }
 0x38f   : > { %v1378_v3 = vpop.f32.mrf.mxu1  ;;  %v1504_v33 = vmax.f32 %v4106_v63, 0.0  ;;  %v4150_v38 = vmin.f32 %v1503_v32, 1.0  ;;  %v1540_v47 = vsub.f32 %v1258_v12, %v4125_v23  ;;  %v1544_v14 = vsub.f32 %v4162_v59, %v4125_v23 }
 0x390   : > { %v1481_v4 = vadd.f32 1e-08, %v4108_v42  ;;  %v4112_v7 = vadd.f32 %v1467_v56, %v1378_v3  ;;  %3009 = vrcp.f32 %v1480_v1  ;;  %v1505_v35 = vmax.f32 %v4108_v42, 0.0 }
 0x391   : > { %v1380_v11 = vpop.f32.mrf.mxu1  ;;  %v1542_v58 = vsub.f32 %v4141_v52, %v4125_v23 }
 0x392   : > { %3011 = vrcp.f32 %v1481_v4  ;;  %v1482_v57 = vadd.f32 1e-08, %v4112_v7  ;;  %v4118_v17 = vadd.f32 %v1469_v62, %v1380_v11  ;;  %v1506_v55 = vmax.f32 %v4112_v7, 0.0 }
 0x393   : > { %v1384_v43 = vpop.f32.mrf.mxu1  ;;  %v4165_v62 = vmin.f32 %v1504_v33, 1.0  ;;  %v4170_v1 = vmin.f32 %v1505_v35, 1.0 }
 0x394   : > { %3013 = vrcp.f32 %v1482_v57  ;;  %v4120_v19 = vadd.f32 %v1473_v41, %v1384_v43  ;;  %v1483_v6 = vadd.f32 1e-08, %v4118_v17  ;;  %v1507_v63 = vmax.f32 %v4118_v17, 0.0 }
 0x395   : > { %v1386_v22 = vpop.f32.mrf.mxu1  ;;  %v4174_v4 = vmin.f32 %v1506_v55, 1.0 }
 0x396   : > { %v1484_v26 = vadd.f32 1e-08, %v4120_v19  ;;  %v4128_v27 = vadd.f32 %v1475_v21, %v1386_v22  ;;  %3015 = vrcp.f32 %v1483_v6  ;;  %v1508_v37 = vmax.f32 %v4120_v19, 0.0 }
 0x397   : > { %v4182_v17 = vmin.f32 %v1507_v63, 1.0 }
 0x398   : > { %3017 = vrcp.f32 %v1484_v26  ;;  %v1485_v9 = vadd.f32 1e-08, %v4128_v27  ;;  %v1509_v7 = vmax.f32 %v4128_v27, 0.0  ;;  %v4184_v43 = vmin.f32 %v1508_v37, 1.0 }
 0x399   : > { %v3006_v2 = vpop.eup %3005 }
 0x39a   : > { %v1494_v10 = vmul.f32 36.0, %v3006_v2  ;;  %3019 = vrcp.f32 %v1485_v9  ;;  %v4188_v27 = vmin.f32 %v1509_v7, 1.0 }
 0x39b   : > { %v3008_v44 = vpop.eup %3007 }
 0x39c   : > { %v1518_v34 = vmul.f32 %v4143_v15, %v1494_v10  ;;  %v1495_v36 = vmul.f32 36.0, %v3008_v44 }
 0x39d   : > { %v3010_v56 = vpop.eup %3009 }
 0x39e   : > { %v1545_v5 = vmul.f32 %v1537_v45, %v1518_v34  ;;  %v1519_v60 = vmul.f32 %v4150_v38, %v1495_v36  ;;  %v1496_v25 = vmul.f32 36.0, %v3010_v56  ;;  %v1731_v56 = vld [vmem:[%s4820_s7 + $0xf0] sm:$0xff] }
 0x39f   : > { %v3012_v61 = vpop.eup %3011 }
 0x3a0   : > { %v1553_v49 = vadd.f32 %v1545_v5, %v4122_v20  ;;  %v1546_v0 = vmul.f32 %v1538_v18, %v1519_v60  ;;  %v1497_v42 = vmul.f32 36.0, %v3012_v61  ;;  %v1520_v51 = vmul.f32 %v4165_v62, %v1496_v25  ;;  %v1684_v60 = vld [vmem:[%s4819_s6 + $0x278] sm:$0xff]  ;;  %v1715_v61 = vld [vmem:[%s4820_s7 + $0x70] sm:$0xff] }
 0x3a1   : > { %v3014_v3 = vpop.eup %3013 }
 0x3a2   : > { %v1561_v8 = vmul.f32 %v1553_v49, %v4143_v15  ;;  %v1521_v41 = vmul.f32 %v4170_v1, %v1497_v42  ;;  %v1498_v11 = vmul.f32 36.0, %v3014_v3  ;;  %v1554_v13 = vadd.f32 %v1546_v0, %v4125_v23  ;;  %v1699_v0 = vld [vmem:[%s4819_s6 + $0x2f0] sm:$0xff] }
 0x3a3   : > { %v1547_v57 = vmul.f32 %v1539_v46, %v1520_v51  ;;  %v3016_v19 = vpop.eup %3015 }
 0x3a4   : > { %v1548_v21 = vmul.f32 %v1540_v47, %v1521_v41  ;;  %v1522_v6 = vmul.f32 %v4174_v4, %v1498_v11  ;;  %v1562_v22 = vmul.f32 %v1554_v13, %v4150_v38  ;;  %vm1570_vm13 = vcmp.ge.f32.partialorder %v1561_v8, 0.0  ;;  %v1714_v41 = vld [vmem:[%s4820_s7 + $0x68] sm:$0xff] }
 0x3a5   : > { %v3018_v24 = vpop.eup %3017  ;;  %v1499_v26 = vmul.f32 36.0, %v3016_v19  ;;  %v1589_v28 = vmul.f32 %v4136_v48, %v1561_v8  ;;  %v1555_v29 = vadd.f32 %v1547_v57, %v4122_v20 }
 0x3a6   : > { %v1549_v30 = vmul.f32 %v1541_v53, %v1522_v6  ;;  %v1500_v31 = vmul.f32 36.0, %v3018_v24  ;;  %vm1571_vm14 = vcmp.ge.f32.partialorder %v1562_v22, 0.0  ;;  %v1590_v32 = vmul.f32 %v4138_v50, %v1562_v22  ;;  %v1716_v53 = vld [vmem:[%s4820_s7 + $0x78] sm:$0xff]  ;;  %v1682_v6 = vld [vmem:[%s4819_s6 + $0x268] sm:$0xff] }
 0x3a7   : > { %v3020_v9 = vpop.eup %3019  ;;  %v1523_v2 = vmul.f32 %v4182_v17, %v1499_v26  ;;  %v1597_v12 = vsel %vm1570_vm13, %v1561_v8, %v1589_v28  ;;  %v1556_v40 = vadd.f32 %v1548_v21, %v4125_v23  ;;  %v1563_v52 = vmul.f32 %v1555_v29, %v4165_v62  ;;  %v1683_v8 = vld [vmem:[%s4819_s6 + $0x270] sm:$0xff]  ;;  %v1713_v28 = vld [vmem:[%s4820_s7 + $0x60] sm:$0xff] }
 0x3a8   : > { %v1524_v10 = vmul.f32 %v4184_v43, %v1500_v31  ;;  %v1501_v44 = vmul.f32 36.0, %v3020_v9  ;;  %v1598_v45 = vsel %vm1571_vm14, %v1562_v22, %v1590_v32  ;;  %v4198_v18 = vmul.f32 %v1597_v12, %v4143_v15  ;;  %v1697_v31 = vld [vmem:[%s4819_s6 + $0x2e0] sm:$0xff] }
 0x3a9   : > { %v1550_v46 = vmul.f32 %v1542_v58, %v1523_v2  ;;  %v4201_v33 = vmul.f32 %v1598_v45, %v4150_v38  ;;  %v1564_v34 = vmul.f32 %v1556_v40, %v4170_v1  ;;  %vm1572_vm15 = vcmp.ge.f32.partialorder %v1563_v52, 0.0  ;;  %v1728_v40 = vld [vmem:[%s4820_s7 + $0xd8] sm:$0xff]  ;;  %v1727_v45 = vld [vmem:[%s4820_s7 + $0xd0] sm:$0xff] }
 0x3aa   : > { %v1551_v36 = vmul.f32 %v1543_v39, %v1524_v10  ;;  %v1525_v35 = vmul.f32 %v4188_v27, %v1501_v44  ;;  %v1814_v47 = vrot.slane %v4198_v18, 7  ;;  %v1591_v54 = vmul.f32 %v4136_v48, %v1563_v52  ;;  %v1730_v39 = vld [vmem:[%s4820_s7 + $0xe8] sm:$0xff]  ;;  %v1696_v44 = vld [vmem:[%s4819_s6 + $0x2d8] sm:$0xff] }
 0x3ab   : > { %2011 = vmatprep.mubr.f32.mxu1 %v4201_v33  ;;  %v1815_v55 = vrot.slane %v4201_v33, 7  ;;  %vm1573_vm0 = vcmp.ge.f32.partialorder %v1564_v34, 0.0  ;;  %v1592_v58 = vmul.f32 %v4138_v50, %v1564_v34  ;;  %v1558_v59 = vadd.f32 %v1550_v46, %v4125_v23 }
 0x3ac   : > { %v1552_v5 = vmul.f32 %v1544_v14, %v1525_v35  ;;  %2012 = vmatmul.mubr.f32.vlgmr.msra.gmra.mxu1 %v4198_v18  ;;  %v1599_v25 = vsel %vm1572_vm15, %v1563_v52, %v1591_v54  ;;  %v1557_v63 = vadd.f32 %v1549_v30, %v4122_v20  ;;  %v1559_v37 = vadd.f32 %v1551_v36, %v4122_v20  ;;  %v1729_v14 = vld [vmem:[%s4820_s7 + $0xe0] sm:$0xff]  ;;  %v1695_v54 = vld [vmem:[%s4819_s6 + $0x2d0] sm:$0xff] }
 0x3ad   : > { %2806 = vmatpush3.msra.mxu1 %v1716_v53  ;;  %2623 = vmatprep.mubr.msk.f32.mxu0 %vm3538_vm10, %v1815_v55  ;;  %v1600_v49 = vsel %vm1573_vm0, %v1564_v34, %v1592_v58  ;;  %v4233_v42 = vmul.f32 %v1599_v25, %v4165_v62  ;;  %v1566_v3 = vmul.f32 %v1558_v59, %v4182_v17  ;;  %v1711_v53 = vld [vmem:[%s4820_s7 + $0x50] sm:$0xff]  ;;  %v1726_v59 = vld [vmem:[%s4820_s7 + $0xc8] sm:$0xff]  ;;  %v1725_v25 = vld [vmem:[%s4820_s7 + $0xc0] sm:$0xff] }
 0x3ae   : > { %2807 = vmatprep.subr.mxu1 %v1731_v56  ;;  %2625 = vmatmul.mubr.msk.f32.vlgmr.msra.gmra.mxu0 %vm3538_vm10, %v1814_v47  ;;  %v4241_v20 = vmul.f32 %v1600_v49, %v4170_v1  ;;  %v1565_v51 = vmul.f32 %v1557_v63, %v4174_v4  ;;  %v1560_v7 = vadd.f32 %v1552_v5, %v4125_v23  ;;  %v1698_v23 = vld [vmem:[%s4819_s6 + $0x2e8] sm:$0xff]  ;;  %v1679_v5 = vld [vmem:[%s4819_s6 + $0x250] sm:$0xff]  ;;  %v2126_v49 = vrot.slane %v4150_v38, 7 }
 0x3af   : > { %2762 = vmatpush3.msra.mxu0 %v1684_v60  ;;  %2808 = vmatpush3.msra.mxu1 %v1715_v61  ;;  %v1816_v11 = vrot.slane %v4233_v42, 7  ;;  %vm1575_vm1 = vcmp.ge.f32.partialorder %v1566_v3, 0.0  ;;  %v1594_v13 = vmul.f32 %v4138_v50, %v1566_v3  ;;  %v1567_v24 = vmul.f32 %v1559_v37, %v4184_v43  ;;  %v1710_v60 = vld [vmem:[%s4820_s7 + $0x48] sm:$0xff] }
 0x3b0   : > { %2016 = vmatprep.mubr.f32.mxu1 %v4241_v20  ;;  %2763 = vmatprep.subr.mxu0 %v1699_v0  ;;  %v1818_v57 = vrot.slane %v4241_v20, 7  ;;  %vm1574_vm2 = vcmp.ge.f32.partialorder %v1565_v51, 0.0  ;;  %v1593_v19 = vmul.f32 %v4136_v48, %v1565_v51  ;;  %v1568_v21 = vmul.f32 %v1560_v7, %v4188_v27  ;;  %v1694_v61 = vld [vmem:[%s4819_s6 + $0x2c8] sm:$0xff]  ;;  %v1724_v7 = vld [vmem:[%s4820_s7 + $0xb8] sm:$0xff] }
 0x3b1   : > { %2809 = vmatprep.subr.mxu1 %v1730_v39  ;;  %2017 = vmatmul.mubr.f32.gmra.mxu1 %v4233_v42  ;;  %v1602_v22 = vsel %vm1575_vm1, %v1566_v3, %v1594_v13  ;;  %vm1576_vm4 = vcmp.ge.f32.partialorder %v1567_v24, 0.0  ;;  %v1595_v2 = vmul.f32 %v4136_v48, %v1567_v24  ;;  %v1817_v12 = vsel %vm1068_vm7, %v1814_v47, %v1816_v11  ;;  %v1712_v48 = vld [vmem:[%s4820_s7 + $0x58] sm:$0xff]  ;;  %v1678_v0 = vld [vmem:[%s4819_s6 + $0x248] sm:$0xff]  ;;  %v1709_v3 = vld [vmem:[%s4820_s7 + $0x40] sm:$0xff] }
 0x3b2   : > { %2764 = vmatpush3.msra.mxu0 %v1683_v8  ;;  %2810 = vmatpush3.msra.mxu1 %v1714_v41  ;;  %v1819_v26 = vsel %vm1068_vm7, %v1815_v55, %v1818_v57  ;;  %v4276_v29 = vmul.f32 %v1602_v22, %v4182_v17  ;;  %v1601_v30 = vsel %vm1574_vm2, %v1565_v51, %v1593_v19  ;;  %vm1577_vm3 = vcmp.ge.f32.partialorder %v1568_v21, 0.0  ;;  %v1680_v47 = vld [vmem:[%s4819_s6 + $0x258] sm:$0xff]  ;;  %v1693_v39 = vld [vmem:[%s4819_s6 + $0x2c0] sm:$0xff]  ;;  %v1707_v19 = vld [vmem:[%s4820_s7 + $0x30] sm:$0xff] }
 0x3b3   : > { %2765 = vmatprep.subr.mxu0 %v1698_v23  ;;  %2811 = vmatprep.subr.mxu1 %v1729_v14  ;;  %v4282_v32 = vmul.f32 %v1601_v30, %v4174_v4  ;;  %v1596_v9 = vmul.f32 %v4138_v50, %v1568_v21  ;;  %v1681_v50 = vld [vmem:[%s4819_s6 + $0x260] sm:$0xff]  ;;  %v1603_v36 = vsel %vm1576_vm4, %v1567_v24, %v1595_v2  ;;  %v1842_v51 = vrot.slane %v4241_v20, 1  ;;  %v1708_v13 = vld [vmem:[%s4820_s7 + $0x38] sm:$0xff]  ;;  %v1723_v14 = vld [vmem:[%s4820_s7 + $0xb0] sm:$0xff] }
 0x3b4   : > { %1931 = vmatprep.mubr.f32.mxu0 %v1819_v26  ;;  %2766 = vmatpush3.msra.mxu0 %v1682_v6  ;;  %v1822_v52 = vrot.slane %v4276_v29, 7  ;;  %v4324_v55 = vmul.f32 %v1603_v36, %v4184_v43  ;;  %v1677_v8 = vld [vmem:[%s4819_s6 + $0x240] sm:$0xff]  ;;  %v1692_v23 = vld [vmem:[%s4819_s6 + $0x2b8] sm:$0xff]  ;;  %v1722_v6 = vld [vmem:[%s4820_s7 + $0xa8] sm:$0xff] }
 0x3b5   : > { %2812 = vmatpush3.msra.mxu1 %v1713_v28  ;;  %1932 = vmatmul.mubr.f32.gmra.mxu0 %v1817_v12  ;;  %v1604_v10 = vsel %vm1577_vm3, %v1568_v21, %v1596_v9  ;;  %v1820_v46 = vrot.slane %v4282_v32, 7  ;;  %v1691_v21 = vld [vmem:[%s4819_s6 + $0x2b0] sm:$0xff]  ;;  %v1706_v24 = vld [vmem:[%s4820_s7 + $0x28] sm:$0xff]  ;;  %v1721_v28 = vld [vmem:[%s4820_s7 + $0xa0] sm:$0xff] }
 0x3b6   : > { %2021 = vmatprep.mubr.f32.mxu1 %v4276_v29  ;;  %2767 = vmatprep.subr.mxu0 %v1697_v31  ;;  %v4309_v34 = vmul.f32 %v1604_v10, %v4188_v27  ;;  %v1823_v35 = vsel %vm1068_vm7, %v1818_v57, %v1822_v52  ;;  %v1824_v37 = vrot.slane %v4324_v55, 7  ;;  %v1676_v57 = vld [vmem:[%s4819_s6 + $0x238] sm:$0xff]  ;;  %v1675_v22 = vld [vmem:[%s4819_s6 + $0x230] sm:$0xff]  ;;  %v1690_v26 = vld [vmem:[%s4819_s6 + $0x2a8] sm:$0xff] }
 0x3b7   : > { %2813 = vmatprep.subr.mxu1 %v1728_v40  ;;  %2022 = vmatmul.mubr.f32.gmra.mxu1 %v4282_v32  ;;  %v1821_v58 = vsel %vm1068_vm7, %v1816_v11, %v1820_v46  ;;  %v1841_v11 = vrot.slane %v4201_v33, 1  ;;  %v1674_v30 = vld [vmem:[%s4819_s6 + $0x228] sm:$0xff]  ;;  %v1705_v31 = vld [vmem:[%s4820_s7 + $0x20] sm:$0xff]  ;;  %v1720_v2 = vld [vmem:[%s4820_s7 + $0x98] sm:$0xff] }
 0x3b8   : > { %2768 = vmatpush3.msra.mxu0 %v1681_v50  ;;  %2814 = vmatpush3.msra.mxu1 %v1712_v48  ;;  %v1826_v56 = vrot.slane %v4309_v34, 7  ;;  %v1825_v41 = vsel %vm1068_vm7, %v1820_v46, %v1824_v37  ;;  %v1689_v9 = vld [vmem:[%s4819_s6 + $0x2a0] sm:$0xff]  ;;  %v1704_v40 = vld [vmem:[%s4820_s7 + $0x18] sm:$0xff]  ;;  %v1719_v50 = vld [vmem:[%s4820_s7 + $0x90] sm:$0xff] }
 0x3b9   : > { %2769 = vmatprep.subr.mxu0 %v1696_v44  ;;  %2815 = vmatprep.subr.mxu1 %v1727_v45  ;;  %v1843_v33 = vsel %vm1081_vm12, %v1841_v11, %v1842_v51  ;;  %v1673_v12 = vld [vmem:[%s4819_s6 + $0x220] sm:$0xff]  ;;  %v1672_v48 = vld [vmem:[%s4819_s6 + $0x218] sm:$0xff]  ;;  %v1703_v10 = vld [vmem:[%s4820_s7 + $0x10] sm:$0xff]  ;;  %v1844_v11 = vrot.slane %v4282_v32, 1 }
 0x3ba   : > { %1936 = vmatprep.mubr.f32.mxu0 %v1823_v35  ;;  %2770 = vmatpush3.msra.mxu0 %v1680_v47  ;;  %v1827_v63 = vsel %vm1068_vm7, %v1822_v52, %v1826_v56  ;;  %v1688_v52 = vld [vmem:[%s4819_s6 + $0x298] sm:$0xff]  ;;  %v1687_v44 = vld [vmem:[%s4819_s6 + $0x290] sm:$0xff]  ;;  %v1718_v45 = vld [vmem:[%s4820_s7 + $0x88] sm:$0xff] }
 0x3bb   : > { %2816 = vmatpush3.msra.mxu1 %v1711_v53  ;;  %1937 = vmatmul.mubr.f32.gmra.mxu0 %v1821_v58  ;;  %v1671_v46 = vld [vmem:[%s4819_s6 + $0x210] sm:$0xff]  ;;  %v1702_v36 = vld [vmem:[%s4820_s7 + $0x8] sm:$0xff]  ;;  %v1717_v47 = vld [vmem:[%s4820_s7 + $0x80] sm:$0xff]  ;;  %v2129_v58 = vrot.slane %v4170_v1, 7 }
 0x3bc   : > { %2026 = vmatprep.mubr.f32.mxu1 %v4309_v34  ;;  %2771 = vmatprep.subr.mxu0 %v1695_v54  ;;  %v1686_v35 = vld [vmem:[%s4819_s6 + $0x288] sm:$0xff]  ;;  %v1701_v54 = vld [vmem:[%s4820_s7] sm:$0xff]  ;;  %v1764_v37 = vld [vmem:[%s4820_s7 + $0x1f8] sm:$0xff] }
 0x3bd   : > { %2817 = vmatprep.subr.mxu1 %v1726_v59  ;;  %2027 = vmatmul.mubr.f32.gmra.mxu1 %v4324_v55  ;;  %v1670_v53 = vld [vmem:[%s4819_s6 + $0x208] sm:$0xff]  ;;  %v1685_v56 = vld [vmem:[%s4819_s6 + $0x280] sm:$0xff]  ;;  %v1839_v59 = vrot.slane %v4233_v42, 1  ;;  %v1846_v42 = vrot.slane %v4276_v29, 1  ;;  %v1795_v29 = vld [vmem:[%s4820_s7 + $0x2f0] sm:$0xff] }
 0x3be   : > { %2772 = vmatpush3.msra.mxu0 %v1679_v5  ;;  %2818 = vmatpush3.msra.mxu1 %v1710_v60  ;;  %v2125_v5 = vrot.slane %v4143_v15, 7  ;;  %v1796_v60 = vld [vmem:[%s4820_s7 + $0x2f8] sm:$0xff]  ;;  %v1747_v20 = vld [vmem:[%s4820_s7 + $0x170] sm:$0xff]  ;;  %v1762_v32 = vld [vmem:[%s4820_s7 + $0x1e8] sm:$0xff] }
 0x3bf   : > { %2773 = vmatprep.subr.mxu0 %v1694_v61  ;;  %2819 = vmatprep.subr.mxu1 %v1725_v25  ;;  %v1669_v61 = vld [vmem:[%s4819_s6 + $0x200] sm:$0xff]  ;;  %v1780_v25 = vld [vmem:[%s4820_s7 + $0x278] sm:$0xff] }
 0x3c0   : > { %2629 = vmatprep.mubr.msk.f32.mxu1 %vm3538_vm10, %v2126_v49  ;;  %1941 = vmatprep.mubr.f32.mxu0 %v1827_v63  ;;  %v1838_v63 = vrot.slane %v4198_v18, 1  ;;  %v1748_v18 = vld [vmem:[%s4820_s7 + $0x178] sm:$0xff] }
 0x3c1   : > { %2774 = vmatpush3.msra.mxu0 %v1678_v0  ;;  %2820 = vmatpush3.msra.mxu1 %v1709_v3  ;;  %v2130_v0 = vsel %vm1068_vm7, %v2126_v49, %v2129_v58  ;;  %v2127_v3 = vrot.slane %v4165_v62, 7  ;;  %v2133_v49 = vrot.slane %v4182_v17, 7 }
 0x3c2   : > { %1942 = vmatmul.mubr.f32.gmra.mxu0 %v1825_v41  ;;  %2775 = vmatprep.subr.mxu0 %v1693_v39  ;;  %v1840_v16 = vsel %vm1081_vm12, %v1838_v63, %v1839_v59  ;;  %v1779_v39 = vld [vmem:[%s4820_s7 + $0x270] sm:$0xff]  ;;  %v1794_v41 = vld [vmem:[%s4820_s7 + $0x2e8] sm:$0xff] }
 0x3c3   : > { %2821 = vmatprep.subr.mxu1 %v1724_v7  ;;  %2776 = vmatpush3.msra.mxu0 %v1677_v8  ;;  %v1847_v7 = vsel %vm1081_vm12, %v1842_v51, %v1846_v42  ;;  %v1763_v8 = vld [vmem:[%s4820_s7 + $0x1f0] sm:$0xff]  ;;  %v1778_v51 = vld [vmem:[%s4820_s7 + $0x268] sm:$0xff] }
 0x3c4   : > { %2096 = vmatprep.mubr.f32.mxu0 %v1843_v33  ;;  %2822 = vmatpush3.msra.mxu1 %v1708_v13  ;;  %v2128_v13 = vsel %vm1068_vm7, %v2125_v5, %v2127_v3  ;;  %v1793_v33 = vld [vmem:[%s4820_s7 + $0x2e0] sm:$0xff]  ;;  %v1787_v63 = vld [vmem:[%s4820_s7 + $0x2b0] sm:$0xff] }
 0x3c5   : > { %2777 = vmatprep.subr.mxu0 %v1692_v23  ;;  %2823 = vmatprep.subr.mxu1 %v1723_v14  ;;  %v1850_v23 = vrot.slane %v4309_v34, 1  ;;  %v2134_v14 = vsel %vm1068_vm7, %v2129_v58, %v2133_v49  ;;  %v1845_v34 = vsel %vm1081_vm12, %v1839_v59, %v1844_v11  ;;  %v1742_v58 = vld [vmem:[%s4820_s7 + $0x148] sm:$0xff]  ;;  %v1773_v59 = vld [vmem:[%s4820_s7 + $0x240] sm:$0xff] }
 0x3c6   : > { %2778 = vmatpush3.msra.mxu0 %v1676_v57  ;;  %2824 = vmatpush3.msra.mxu1 %v1707_v19  ;;  %v2131_v57 = vrot.slane %v4174_v4, 7  ;;  %v1746_v19 = vld [vmem:[%s4820_s7 + $0x168] sm:$0xff] }
 0x3c7   : > { %2779 = vmatprep.subr.mxu0 %v1691_v21  ;;  %2825 = vmatprep.subr.mxu1 %v1722_v6  ;;  %v1777_v21 = vld [vmem:[%s4820_s7 + $0x260] sm:$0xff]  ;;  %v2137_v6 = vrot.slane %v4188_v27, 7 }
 0x3c8   : > { %2780 = vmatpush3.msra.mxu0 %v1675_v22  ;;  %2826 = vmatpush3.msra.mxu1 %v1706_v24  ;;  %v1851_v22 = vsel %vm1081_vm12, %v1846_v42, %v1850_v23  ;;  %v1761_v24 = vld [vmem:[%s4820_s7 + $0x1e0] sm:$0xff]  ;;  %v1756_v42 = vld [vmem:[%s4820_s7 + $0x1b8] sm:$0xff] }
 0x3c9   : > { %2781 = vmatprep.subr.mxu0 %v1690_v26  ;;  %2827 = vmatprep.subr.mxu1 %v1721_v28  ;;  %v1792_v26 = vld [vmem:[%s4820_s7 + $0x2d8] sm:$0xff]  ;;  %v1848_v28 = vrot.slane %v4324_v55, 1 }
 0x3ca   : > { %2782 = vmatpush3.msra.mxu0 %v1674_v30  ;;  %2828 = vmatpush3.msra.mxu1 %v1705_v31  ;;  %v2132_v30 = vsel %vm1068_vm7, %v2127_v3, %v2131_v57  ;;  %v1745_v31 = vld [vmem:[%s4820_s7 + $0x160] sm:$0xff]  ;;  %v1760_v55 = vld [vmem:[%s4820_s7 + $0x1d8] sm:$0xff]  ;;  %v1739_v3 = vld [vmem:[%s4820_s7 + $0x130] sm:$0xff] }
 0x3cb   : > { %2783 = vmatprep.subr.mxu0 %v1689_v9  ;;  %2829 = vmatprep.subr.mxu1 %v1720_v2  ;;  %v1776_v9 = vld [vmem:[%s4820_s7 + $0x258] sm:$0xff]  ;;  %v2138_v2 = vsel %vm1068_vm7, %v2133_v49, %v2137_v6  ;;  %v1738_v49 = vld [vmem:[%s4820_s7 + $0x128] sm:$0xff]  ;;  %v2150_v6 = vrot.slane %v4165_v62, 1 }
 0x3cc   : > { %2784 = vmatpush3.msra.mxu0 %v1673_v12  ;;  %2830 = vmatpush3.msra.mxu1 %v1704_v40  ;;  %v1791_v12 = vld [vmem:[%s4820_s7 + $0x2d0] sm:$0xff]  ;;  %v2135_v40 = vrot.slane %v4184_v43, 7 }
 0x3cd   : > { %2785 = vmatprep.subr.mxu0 %v1688_v52  ;;  %2831 = vmatprep.subr.mxu1 %v1719_v50  ;;  %v1849_v52 = vsel %vm1081_vm12, %v1844_v11, %v1848_v28  ;;  %v1744_v50 = vld [vmem:[%s4820_s7 + $0x158] sm:$0xff]  ;;  %v1737_v11 = vld [vmem:[%s4820_s7 + $0x120] sm:$0xff] }
 0x3ce   : > { %2786 = vmatpush3.msra.mxu0 %v1672_v48  ;;  %2832 = vmatpush3.msra.mxu1 %v1703_v10  ;;  %v1775_v48 = vld [vmem:[%s4820_s7 + $0x250] sm:$0xff] }
 0x3cf   : > { %2787 = vmatprep.subr.mxu0 %v1687_v44  ;;  %2833 = vmatprep.subr.mxu1 %v1718_v45  ;;  %v1759_v10 = vld [vmem:[%s4820_s7 + $0x1d0] sm:$0xff]  ;;  %v2153_v44 = vrot.slane %v4170_v1, 1  ;;  %v1790_v45 = vld [vmem:[%s4820_s7 + $0x2c8] sm:$0xff] }
 0x3d0   : > { %2788 = vmatpush3.msra.mxu0 %v1671_v46  ;;  %2834 = vmatpush3.msra.mxu1 %v1702_v36  ;;  %v1743_v46 = vld [vmem:[%s4820_s7 + $0x150] sm:$0xff]  ;;  %v2136_v36 = vsel %vm1068_vm7, %v2131_v57, %v2135_v40 }
 0x3d1   : > { %2789 = vmatprep.subr.mxu0 %v1686_v35  ;;  %2835 = vmatprep.subr.mxu1 %v1717_v47  ;;  %v1774_v35 = vld [vmem:[%s4820_s7 + $0x248] sm:$0xff]  ;;  %v2152_v47 = vrot.slane %v4150_v38, 1  ;;  %v1735_v57 = vld [vmem:[%s4820_s7 + $0x110] sm:$0xff] }
 0x3d2   : > { %2790 = vmatpush3.msra.mxu0 %v1670_v53  ;;  %2836 = vmatpush3.msra.mxu1 %v1701_v54  ;;  %v1758_v53 = vld [vmem:[%s4820_s7 + $0x1c8] sm:$0xff] }
 0x3d3   : > { %2791 = vmatprep.subr.mxu0 %v1685_v56  ;;  %2631 = vmatmul.mubr.msk.f32.vlgmr.msra.gmra.mxu1 %vm3538_vm10, %v2125_v5  ;;  %v2154_v54 = vsel %vm1081_vm12, %v2152_v47, %v2153_v44  ;;  %v1789_v56 = vld [vmem:[%s4820_s7 + $0x2c0] sm:$0xff] }
 0x3d4   : > { %2893 = vmatprep.subr.mxu1 %v1796_v60  ;;  %2792 = vmatpush3.msra.mxu0 %v1669_v61  ;;  %v1757_v5 = vld [vmem:[%s4820_s7 + $0x1c0] sm:$0xff]  ;;  %v1788_v60 = vld [vmem:[%s4820_s7 + $0x2b8] sm:$0xff] }
 0x3d5   : > { %2242 = vmatprep.mubr.f32.mxu1 %v2130_v0  ;;  %2894 = vmatpush3.msra.mxu1 %v1780_v25  ;;  %v1741_v61 = vld [vmem:[%s4820_s7 + $0x140] sm:$0xff]  ;;  %v1772_v25 = vld [vmem:[%s4820_s7 + $0x238] sm:$0xff]  ;;  %v1771_v0 = vld [vmem:[%s4820_s7 + $0x230] sm:$0xff] }
 0x3d6   : > { %2097 = vmatmul.mubr.f32.vlgmr.msra.gmra.mxu0 %v1840_v16  ;;  %2849 = vmatprep.subr.mxu0 %v1764_v37  ;;  %v1740_v37 = vld [vmem:[%s4820_s7 + $0x138] sm:$0xff]  ;;  %v1770_v16 = vld [vmem:[%s4820_s7 + $0x228] sm:$0xff] }
 0x3d7   : > { %2895 = vmatprep.subr.mxu1 %v1795_v29  ;;  %2101 = vmatprep.mubr.f32.mxu0 %v1847_v7  ;;  %v1786_v29 = vld [vmem:[%s4820_s7 + $0x2a8] sm:$0xff]  ;;  %v1769_v7 = vld [vmem:[%s4820_s7 + $0x220] sm:$0xff] }
 0x3d8   : > { %2850 = vmatpush3.msra.mxu0 %v1748_v18  ;;  %2896 = vmatpush3.msra.mxu1 %v1779_v39  ;;  %v1754_v18 = vld [vmem:[%s4820_s7 + $0x1a8] sm:$0xff]  ;;  %v1785_v39 = vld [vmem:[%s4820_s7 + $0x2a0] sm:$0xff] }
 0x3d9   : > { %2243 = vmatmul.mubr.f32.gmra.mxu1 %v2128_v13  ;;  %2851 = vmatprep.subr.mxu0 %v1763_v8  ;;  %v1753_v8 = vld [vmem:[%s4820_s7 + $0x1a0] sm:$0xff]  ;;  %v1768_v13 = vld [vmem:[%s4820_s7 + $0x218] sm:$0xff] }
 0x3da   : > { %2897 = vmatprep.subr.mxu1 %v1794_v41  ;;  %2247 = vmatprep.mubr.f32.mxu1 %v2134_v14  ;;  %v1784_v41 = vld [vmem:[%s4820_s7 + $0x298] sm:$0xff]  ;;  %v1767_v14 = vld [vmem:[%s4820_s7 + $0x210] sm:$0xff] }
 0x3db   : > { %2852 = vmatpush3.msra.mxu0 %v1747_v20  ;;  %2898 = vmatpush3.msra.mxu1 %v1778_v51  ;;  %v1752_v20 = vld [vmem:[%s4820_s7 + $0x198] sm:$0xff]  ;;  %v1783_v51 = vld [vmem:[%s4820_s7 + $0x290] sm:$0xff] }
 0x3dc   : > { %2102 = vmatmul.mubr.f32.gmra.mxu0 %v1845_v34  ;;  %2853 = vmatprep.subr.mxu0 %v1762_v32  ;;  %v1751_v32 = vld [vmem:[%s4820_s7 + $0x190] sm:$0xff]  ;;  %v1766_v34 = vld [vmem:[%s4820_s7 + $0x208] sm:$0xff] }
 0x3dd   : > { %2899 = vmatprep.subr.mxu1 %v1793_v33  ;;  %2106 = vmatprep.mubr.f32.mxu0 %v1851_v22  ;;  %v1782_v33 = vld [vmem:[%s4820_s7 + $0x288] sm:$0xff] }
 0x3de   : > { %2854 = vmatpush3.msra.mxu0 %v1746_v19  ;;  %2900 = vmatpush3.msra.mxu1 %v1777_v21  ;;  %v1750_v19 = vld [vmem:[%s4820_s7 + $0x188] sm:$0xff]  ;;  %v1781_v21 = vld [vmem:[%s4820_s7 + $0x280] sm:$0xff] }
 0x3df   : > { %2248 = vmatmul.mubr.f32.gmra.mxu1 %v2132_v30  ;;  %2855 = vmatprep.subr.mxu0 %v1761_v24  ;;  %v1734_v22 = vld [vmem:[%s4820_s7 + $0x108] sm:$0xff]  ;;  %v1765_v24 = vld [vmem:[%s4820_s7 + $0x200] sm:$0xff]  ;;  %v2149_v30 = vrot.slane %v4143_v15, 1 }
 0x3e0   : > { %2901 = vmatprep.subr.mxu1 %v1792_v26  ;;  %2252 = vmatprep.mubr.f32.mxu1 %v2138_v2  ;;  %v2157_v26 = vrot.slane %v4182_v17, 1  ;;  %v2155_v2 = vrot.slane %v4174_v4, 1 }
 0x3e1   : > { %2856 = vmatpush3.msra.mxu0 %v1745_v31  ;;  %2902 = vmatpush3.msra.mxu1 %v1776_v9  ;;  %v1733_v31 = vld [vmem:[%s4820_s7 + $0x100] sm:$0xff]  ;;  %v2151_v9 = vsel %vm1081_vm12, %v2149_v30, %v2150_v6 }
 0x3e2   : > { %2107 = vmatmul.mubr.f32.gmra.mxu0 %v1849_v52  ;;  %2857 = vmatprep.subr.mxu0 %v1760_v55  ;;  %v2158_v55 = vsel %vm1081_vm12, %v2153_v44, %v2157_v26  ;;  %v2156_v40 = vsel %vm1081_vm12, %v2150_v6, %v2155_v2  ;;  %v2159_v52 = vrot.slane %v4184_v43, 1 }
 0x3e3   : > { %2903 = vmatprep.subr.mxu1 %v1791_v12  ;;  %2626 = vmatprep.mubr.msk.f32.mxu0 %vm1081_vm12, %v1850_v23  ;;  %v1736_v23 = vld [vmem:[%s4820_s7 + $0x118] sm:$0xff]  ;;  %v2161_v12 = vrot.slane %v4188_v27, 1 }
 0x3e4   : > { %2858 = vmatpush3.msra.mxu0 %v1744_v50  ;;  %2904 = vmatpush3.msra.mxu1 %v1775_v48  ;;  %v2160_v48 = vsel %vm1081_vm12, %v2155_v2, %v2159_v52 }
 0x3e5   : > { %2253 = vmatmul.mubr.f32.gmra.mxu1 %v2136_v36  ;;  %2859 = vmatprep.subr.mxu0 %v1759_v10  ;;  %v2162_v50 = vsel %vm1081_vm12, %v2157_v26, %v2161_v12 }
 0x3e6   : > { %2905 = vmatprep.subr.mxu1 %v1790_v45  ;;  %2860 = vmatpush3.msra.mxu0 %v1743_v46 }
 0x3e7   : > { %2906 = vmatpush3.msra.mxu1 %v1774_v35  ;;  %2407 = vmatprep.mubr.f32.mxu1 %v2154_v54 }
 0x3e8   : > { %2627 = vmatmul.mubr.msk.f32.gmra.mxu0 %vm1081_vm12, %v1848_v28  ;;  %2861 = vmatprep.subr.mxu0 %v1758_v53  ;;  %v1749_v28 = vld [vmem:[%s4820_s7 + $0x180] sm:$0xff] }
 0x3e9   : > { %2907 = vmatprep.subr.mxu1 %v1789_v56  ;;  %2862 = vmatpush3.msra.mxu0 %v1742_v58 }
 0x3ea   : > { %2322 = vmatprep.mubr.f32.mxu0 %v4150_v38  ;;  %2908 = vmatpush3.msra.mxu1 %v1773_v59  ;;  %v1755_v38 = vld [vmem:[%s4820_s7 + $0x1b0] sm:$0xff] }
 0x3eb   : > { %2863 = vmatprep.subr.mxu0 %v1757_v5  ;;  %2909 = vmatprep.subr.mxu1 %v1788_v60 }
 0x3ec   : > { %2864 = vmatpush3.msra.mxu0 %v1741_v61  ;;  %2910 = vmatpush3.msra.mxu1 %v1772_v25 }
 0x3ed   : > { %2865 = vmatprep.subr.mxu0 %v1756_v42  ;;  %2911 = vmatprep.subr.mxu1 %v1787_v63 }
 0x3ee   : > { %2866 = vmatpush3.msra.mxu0 %v1740_v37  ;;  %2912 = vmatpush3.msra.mxu1 %v1771_v0 }
 0x3ef   : > { %2867 = vmatprep.subr.mxu0 %v1755_v38  ;;  %2913 = vmatprep.subr.mxu1 %v1786_v29 }
 0x3f0   : > { %2868 = vmatpush3.msra.mxu0 %v1739_v3  ;;  %2914 = vmatpush3.msra.mxu1 %v1770_v16 }
 0x3f1   : > { %2869 = vmatprep.subr.mxu0 %v1754_v18  ;;  %2915 = vmatprep.subr.mxu1 %v1785_v39 }
 0x3f2   : > { %2870 = vmatpush3.msra.mxu0 %v1738_v49  ;;  %2916 = vmatpush3.msra.mxu1 %v1769_v7 }
 0x3f3   : > { %2871 = vmatprep.subr.mxu0 %v1753_v8  ;;  %2917 = vmatprep.subr.mxu1 %v1784_v41 }
 0x3f4   : > { %2872 = vmatpush3.msra.mxu0 %v1737_v11  ;;  %2918 = vmatpush3.msra.mxu1 %v1768_v13 }
 0x3f5   : > { %2873 = vmatprep.subr.mxu0 %v1752_v20  ;;  %2919 = vmatprep.subr.mxu1 %v1783_v51 }
 0x3f6   : > { %2874 = vmatpush3.msra.mxu0 %v1736_v23  ;;  %2920 = vmatpush3.msra.mxu1 %v1767_v14 }
 0x3f7   : > { %2875 = vmatprep.subr.mxu0 %v1751_v32  ;;  %2921 = vmatprep.subr.mxu1 %v1782_v33 }
 0x3f8   : > { %2876 = vmatpush3.msra.mxu0 %v1735_v57  ;;  %2922 = vmatpush3.msra.mxu1 %v1766_v34 }
 0x3f9   : > { %2877 = vmatprep.subr.mxu0 %v1750_v19  ;;  %2923 = vmatprep.subr.mxu1 %v1781_v21 }
 0x3fa   : > { %2878 = vmatpush3.msra.mxu0 %v1734_v22  ;;  %2924 = vmatpush3.msra.mxu1 %v1765_v24 }
 0x3fb   : > { %2879 = vmatprep.subr.mxu0 %v1749_v28  ;;  %2408 = vmatmul.mubr.f32.vlgmr.msra.gmra.mxu1 %v2151_v9 }
 0x3fc   : > { %2880 = vmatpush3.msra.mxu0 %v1733_v31  ;;  %2412 = vmatprep.mubr.f32.mxu1 %v2158_v55 }
 0x3fd   : > { %2323 = vmatmul.mubr.f32.vlgmr.msra.gmra.mxu0 %v4143_v15 }
 0x3fe   : > { %2327 = vmatprep.mubr.f32.mxu0 %v4170_v1 }
 0x3ff   : > { %2413 = vmatmul.mubr.f32.gmra.mxu1 %v2156_v40 }
 0x400   : > { %2417 = vmatprep.mubr.f32.mxu1 %v2162_v50 }
 0x401   : > { %2328 = vmatmul.mubr.f32.gmra.mxu0 %v4165_v62 }
 0x402   : > { %2332 = vmatprep.mubr.f32.mxu0 %v4182_v17 }
 0x403   : > { %2418 = vmatmul.mubr.f32.gmra.mxu1 %v2160_v48 }
 0x404   : > { %2632 = vmatprep.mubr.msk.f32.mxu1 %vm1081_vm12, %v2161_v12 }
 0x405   : > { %2333 = vmatmul.mubr.f32.gmra.mxu0 %v4174_v4 }
 0x406   : > { %2337 = vmatprep.mubr.f32.mxu0 %v4188_v27 }
 0x407   : > { %2633 = vmatmul.mubr.msk.f32.gmra.mxu1 %vm1081_vm12, %v2159_v52 }
 0x409   : > { %2338 = vmatmul.mubr.f32.gmra.mxu0 %v4184_v43 }
 0x46c   : > { %v4718_v15 = vpop.f32.mrf.mxu1 }
 0x46e   : > { %v4720_v1 = vpop.f32.mrf.mxu0  ;;  %v4722_v62 = vpop.f32.mrf.mxu1 }
 0x470   : > { %v4724_v17 = vpop.f32.mrf.mxu0 }
 0x471   : > { %v4726_v10 = vpop.f32.mrf.mxu1 }
 0x473   : > { %v4730_v45 = vpop.f32.mrf.mxu1 }
 0x475   : > { %v4728_v44 = vpop.f32.mrf.mxu0 }
 0x477   : > { %v4732_v4 = vpop.f32.mrf.mxu0  ;;  %v4734_v27 = vpop.f32.mrf.mxu1 }
 0x479   : > { %v4738_v43 = vpop.f32.mrf.mxu1 }
 0x47b   : > { %v4736_v46 = vpop.f32.mrf.mxu0 }
 0x47d   : > { %v4740_v36 = vpop.f32.mrf.mxu0  ;;  %v4742_v35 = vpop.f32.mrf.mxu1 }
 0x47f   : > { %v4746_v53 = vpop.f32.mrf.mxu1 }
 0x482   : > { %v4744_v47 = vpop.f32.mrf.mxu0 }
 0x484   : > { %v4748_v54 = vpop.f32.mrf.mxu0 }
 0x493   : > { %v2837_v56 = vpop.f32.mrf.mxu1 }
 0x495   : > { %v2838_v59 = vpop.f32.mrf.mxu1 }
 0x496   : > { %v4750_v58 = vpop.f32.mrf.mxu0  ;;  %v2839_v11 = vadd.f32 %v2838_v59, %v2837_v56 }
 0x498   : > { %v4752_v5 = vpop.f32.mrf.mxu0 }
 0x499   : > { %v2840_v60 = vpop.f32.mrf.mxu1 }
 0x49b   : > { %v2841_v25 = vpop.f32.mrf.mxu1 }
 0x49c   : > { %v4754_v61 = vpop.f32.mrf.mxu0  ;;  %v2842_v57 = vadd.f32 %v2841_v25, %v2840_v60 }
 0x49e   : > { %v4756_v42 = vpop.f32.mrf.mxu0 }
 0x49f   : > { %v2843_v63 = vpop.f32.mrf.mxu1 }
 0x4a1   : > { %v2844_v0 = vpop.f32.mrf.mxu1 }
 0x4a2   : > { %v4758_v37 = vpop.f32.mrf.mxu0  ;;  %v2845_v30 = vadd.f32 %v2844_v0, %v2843_v63 }
 0x4a4   : > { %v4760_v38 = vpop.f32.mrf.mxu0 }
 0x4a5   : > { %v2846_v29 = vpop.f32.mrf.mxu1 }
 0x4a7   : > { %v2847_v16 = vpop.f32.mrf.mxu1 }
 0x4a8   : > { %v4762_v3 = vpop.f32.mrf.mxu0  ;;  %v2848_v59 = vadd.f32 %v2847_v16, %v2846_v29  ;;  %v2795_v29 = vadd.f32 %v4752_v5, %v4750_v58 }
 0x4aa   : > { %v4764_v18 = vpop.f32.mrf.mxu0 }
 0x4bb   : > { %v2925_v39 = vpop.f32.mrf.mxu1 }
 0x4bd   : > { %v2881_v49 = vpop.f32.mrf.mxu0  ;;  %v2926_v7 = vpop.f32.mrf.mxu1 }
 0x4be   : > { %v2927_v23 = vadd.f32 %v2926_v7, %v2925_v39 }
 0x4bf   : > { %v2882_v8 = vpop.f32.mrf.mxu0  ;;  %v2928_v41 = vpop.f32.mrf.mxu1 }
 0x4c0   : > { %v2883_v13 = vadd.f32 %v2882_v8, %v2881_v49  ;;  %v2707_v49 = vadd.f32 %v4724_v17, %v4720_v1 }
 0x4c1   : > { %v2884_v20 = vpop.f32.mrf.mxu0  ;;  %v2929_v51 = vpop.f32.mrf.mxu1 }
 0x4c2   : > { %v2325_v14 = vadd.f32 %v2883_v13, %v2839_v11  ;;  %v2930_v26 = vadd.f32 %v2929_v51, %v2928_v41  ;;  %v2751_v13 = vadd.f32 %v4722_v62, %v4718_v15  ;;  %v2710_v51 = vadd.f32 %v4732_v4, %v4728_v44 }
 0x4c3   : > { %v2885_v32 = vpop.f32.mrf.mxu0  ;;  %v2931_v33 = vpop.f32.mrf.mxu1  ;;  %v2798_v15 = vadd.f32 %v4756_v42, %v4754_v61  ;;  %v2713_v44 = vadd.f32 %v4740_v36, %v4736_v46  ;;  %v2801_v61 = vadd.f32 %v4760_v38, %v4758_v37  ;;  %v2760_v46 = vadd.f32 %v4746_v53, %v4742_v35 }
 0x4c4   : > { %v2410_v34 = vadd.f32 %v2927_v23, %v2325_v14  ;;  %v2886_v19 = vadd.f32 %v2885_v32, %v2884_v20  ;;  %v2014_v23 = vadd.f32 %v2751_v13, %v2707_v49  ;;  %v2754_v14 = vadd.f32 %v4730_v45, %v4726_v10 }
 0x4c5   : > { %v2887_v21 = vpop.f32.mrf.mxu0  ;;  %v2932_v6 = vpop.f32.mrf.mxu1  ;;  %v2757_v10 = vadd.f32 %v4738_v43, %v4734_v27  ;;  %v2804_v27 = vadd.f32 %v4764_v18, %v4762_v3 }
 0x4c6   : > { %v2428_v22 = vadd.f32 1e-08, %v2410_v34  ;;  %v2440_v24 = vmax.f32 %v2410_v34, 0.0  ;;  %v2330_v28 = vadd.f32 %v2886_v19, %v2842_v57  ;;  %v2933_v48 = vadd.f32 %v2932_v6, %v2931_v33  ;;  %v2634_v33 = vld [vmem:[%s4824_s11] ss:$0 sm:$0xff] }
 0x4c7   : > { %v2888_v31 = vpop.f32.mrf.mxu0  ;;  %v2934_v9 = vpop.f32.mrf.mxu1  ;;  %v2099_v62 = vadd.f32 %v2795_v29, %v2014_v23  ;;  %v2019_v32 = vadd.f32 %v2754_v14, %v2710_v51  ;;  %v2024_v19 = vadd.f32 %v2757_v10, %v2713_v44 }
 0x4c8   : > { %3021 = vrcp.f32 %v2428_v22  ;;  %v2444_v2 = vmin.f32 %v2440_v24, 1.0  ;;  %v2415_v55 = vadd.f32 %v2930_v26, %v2330_v28  ;;  %v2889_v12 = vadd.f32 %v2888_v31, %v2887_v21 }
 0x4c9   : > { %v2890_v40 = vpop.f32.mrf.mxu0  ;;  %v2935_v60 = vpop.f32.mrf.mxu1  ;;  %v2104_v57 = vadd.f32 %v2798_v15, %v2019_v32  ;;  %v2458_v45 = vsub.f32 %v2099_v62, %v2634_v33  ;;  %v2716_v21 = vadd.f32 %v4748_v54, %v4744_v47  ;;  %v2109_v24 = vadd.f32 %v2801_v61, %v2024_v19 }
 0x4ca   : > { %2478 = vst [vmem:[%s4772_s24] sm:$0xff] %v2444_v2  ;;  %v2429_v52 = vadd.f32 1e-08, %v2415_v55  ;;  %v2441_v50 = vmax.f32 %v2415_v55, 0.0  ;;  %v2335_v56 = vadd.f32 %v2889_v12, %v2845_v30  ;;  %v2936_v41 = vadd.f32 %v2935_v60, %v2934_v9 }
 0x4cb   : > { %v2891_v25 = vpop.f32.mrf.mxu0  ;;  %v2459_v36 = vsub.f32 %v2104_v57, %v2634_v33  ;;  %v2029_v37 = vadd.f32 %v2760_v46, %v2716_v21  ;;  %v2460_v30 = vsub.f32 %v2109_v24, %v2634_v33 }
 0x4cc   : > { %3023 = vrcp.f32 %v2429_v52  ;;  %v2445_v39 = vmin.f32 %v2441_v50, 1.0  ;;  %v2420_v63 = vadd.f32 %v2933_v48, %v2335_v56  ;;  %v2892_v0 = vadd.f32 %v2891_v25, %v2890_v40 }
 0x4cd   : > { %v2114_v31 = vadd.f32 %v2804_v27, %v2029_v37 }
 0x4ce   : > { %2479 = vst [vmem:[%s4772_s24 + $0x8] sm:$0xff] %v2445_v39  ;;  %v2430_v7 = vadd.f32 1e-08, %v2420_v63  ;;  %v2442_v8 = vmax.f32 %v2420_v63, 0.0  ;;  %v2340_v11 = vadd.f32 %v2892_v0, %v2848_v59 }
 0x4cf   : > { %v2461_v12 = vsub.f32 %v2114_v31, %v2634_v33 }
 0x4d0   : > { %3025 = vrcp.f32 %v2430_v7  ;;  %v2446_v16 = vmin.f32 %v2442_v8, 1.0  ;;  %v2425_v20 = vadd.f32 %v2936_v41, %v2340_v11 }
 0x4d2   : > { %2480 = vst [vmem:[%s4772_s24 + $0x10] sm:$0xff] %v2446_v16  ;;  %v2431_v1 = vadd.f32 1e-08, %v2425_v20  ;;  %v2443_v17 = vmax.f32 %v2425_v20, 0.0 }
 0x4d4   : > { %3027 = vrcp.f32 %v2431_v1  ;;  %v2447_v58 = vmin.f32 %v2443_v17, 1.0 }
 0x4d5   : > { %v3022_v5 = vpop.eup %3021 }
 0x4d6   : > { %v2436_v4 = vmul.f32 72.0, %v3022_v5  ;;  %2481 = vst [vmem:[%s4772_s24 + $0x18] sm:$0xff] %v2447_v58 }
 0x4d8   : > { %v2448_v42 = vmul.f32 %v2444_v2, %v2436_v4 }
 0x4d9   : > { %v3024_v34 = vpop.eup %3023 }
 0x4da   : > { %v2462_v6 = vmul.f32 %v2458_v45, %v2448_v42  ;;  %v2437_v22 = vmul.f32 72.0, %v3024_v34 }
 0x4dc   : > { %v2466_v43 = vadd.f32 %v2634_v33, %v2462_v6  ;;  %v2449_v26 = vmul.f32 %v2445_v39, %v2437_v22 }
 0x4dd   : > { %v3026_v28 = vpop.eup %3025 }
 0x4de   : > { %v2470_v47 = vmul.f32 %v2466_v43, %v2444_v2  ;;  %v2463_v54 = vmul.f32 %v2459_v36, %v2449_v26  ;;  %v2438_v38 = vmul.f32 72.0, %v3026_v28 }
 0x4e0   : > { %2474 = vst [vmem:[%s468_s30] sm:$0xff] %v2470_v47  ;;  %v2467_v35 = vadd.f32 %v2634_v33, %v2463_v54  ;;  %v2450_v53 = vmul.f32 %v2446_v16, %v2438_v38 }
 0x4e1   : > { %v3028_v9 = vpop.eup %3027 }
 0x4e2   : > { %v2471_v55 = vmul.f32 %v2467_v35, %v2445_v39  ;;  %v2464_v3 = vmul.f32 %v2460_v30, %v2450_v53  ;;  %v2439_v18 = vmul.f32 72.0, %v3028_v9 }
 0x4e4   : > { %2475 = vst [vmem:[%s468_s30 + $0x8] sm:$0xff] %v2471_v55  ;;  %v2468_v40 = vadd.f32 %v2634_v33, %v2464_v3  ;;  %v2451_v52 = vmul.f32 %v2447_v58, %v2439_v18 }
 0x4e6   : > { %v2472_v50 = vmul.f32 %v2468_v40, %v2446_v16  ;;  %v2465_v48 = vmul.f32 %v2461_v12, %v2451_v52 }
 0x4e8   : > { %2476 = vst [vmem:[%s468_s30 + $0x10] sm:$0xff] %v2472_v50  ;;  %v2469_v56 = vadd.f32 %v2634_v33, %v2465_v48 }
 0x4ea   : > { %v2473_v2 = vmul.f32 %v2469_v56, %v2447_v58 }
 0x4ec   : > { %2477 = vst [vmem:[%s468_s30 + $0x18] sm:$0xff] %v2473_v2 }
 0x4ed PF: > { %s24_s25 = sadd.s32 1, %s3035_s25  }
 0x4ee   : > { %p21_p4 = scmp.ge.s32.totalorder %s24_s25, 4  }
 0x4f0   :  { %23 = sbr.rel (!%p21_p4) target bundleno = 1 (0x1), region = 113 }

</bundles_post_ra>
